<compile_context>
chip_gen: v5e
topology: v5e:2x2
jax: 0.10.0
libtpu: 0.0.40
codegen_flags: <defaults>
</compile_context>

<pallas_src>
import functools

import jax
import jax.numpy as jnp
from jax import lax
from jax.experimental import pallas as pl
from jax.experimental.pallas import tpu as pltpu


def _fused_forward_kernel(ids_sm_ref, ids_row_ref, emb_hbm_ref, w_ref, b_ref,
                          mask_ref, out_ref, hid_ref, gather_sem,
                          *, start_tok, end_tok, seq_len, ts):
    b = pl.program_id(0)
    s0 = pl.program_id(1) * ts

    # ---- 1. embedding row gather: HBM table -> VMEM tile (real gather) ----
    # Static destination rows (Python-unrolled), dynamic source rows from the
    # scalar-prefetched ids in SMEM.  All DMAs share one semaphore.
    # TODO(synk): double-buffer the gather across grid steps when scaling.
    for r in range(ts):
        tok = ids_sm_ref[b, s0 + r]
        pltpu.make_async_copy(emb_hbm_ref.at[pl.ds(tok, 1), :],
                              hid_ref.at[pl.ds(r, 1), :],
                              gather_sem.at[0]).start()

    # ---- 2. span mask for this batch row (overlaps the gather DMAs) -------
    # create_attention_masks: first start token .. first end token, whole row
    # zero if either is missing (or end precedes start).
    ids_row = ids_row_ref[...]                                  # [1, 1, S]
    pos = lax.broadcasted_iota(jnp.int32, ids_row.shape, 2)
    is_start = ids_row == start_tok
    is_end = ids_row == end_tok
    sentinel = jnp.int32(seq_len)
    start_idx = jnp.min(jnp.where(is_start, pos, sentinel), axis=2, keepdims=True)
    end_idx = jnp.min(jnp.where(is_end, pos, sentinel), axis=2, keepdims=True)
    found = (jnp.max(is_start.astype(jnp.int32), axis=2, keepdims=True) *
             jnp.max(is_end.astype(jnp.int32), axis=2, keepdims=True))
    mask_ref[...] = ((pos >= start_idx) & (pos <= end_idx)
                     & (found > 0)).astype(jnp.int32)

    # Per-token mask for this seq tile as a [TS, 1] column via a sublane iota
    # (no relayout, no per-batch select loop needed with this grid).
    start_c = start_idx.reshape(1, 1)
    end_c = end_idx.reshape(1, 1)
    found_c = found.reshape(1, 1)
    pos_col = s0 + lax.broadcasted_iota(jnp.int32, (ts, 1), 0)
    mask_col = ((pos_col >= start_c) & (pos_col <= end_c)
                & (found_c > 0)).astype(jnp.float32)            # [TS, 1]

    # ---- 3. wait for the gathered embedding rows ---------------------------
    for _ in range(ts):
        pltpu.make_async_copy(emb_hbm_ref.at[pl.ds(0, 1), :],
                              hid_ref.at[pl.ds(0, 1), :],
                              gather_sem.at[0]).wait()

    # ---- 4. fc head; mask applied AFTER the matmul (exact for a per-row
    #         scalar with bias added afterwards).  Cast hid/w to bf16 with
    #         f32 accumulation at real backbone widths.
    logits = jnp.dot(hid_ref[...], w_ref[...],
                     preferred_element_type=jnp.float32,
                     precision=lax.Precision.HIGHEST)           # [TS, TPAD]
    out_ref[0] = logits * mask_col + b_ref[...]


def _round_up(x, m):
    return ((x + m - 1) // m) * m


def custom_model2_forward(input_ids, emb_table, fc_w, fc_b, start_tok, end_tok):
    B, S = input_ids.shape
    VOCAB, H = emb_table.shape
    T = fc_w.shape[1]
    HPAD = _round_up(H, 128)          # zero-padded contraction dim (exact)
    TPAD = _round_up(T, 128)          # lane-dense output -> unmasked stores

    # Rows per tile: match the MXU height (256 on v6e/v7x; 128 on v5e).
    TS = S if S <= 256 else 256
    assert S % TS == 0, "pad S to a multiple of the seq tile"
    grid = (B, S // TS)

    # Parameters.  The embedding table stays HBM-resident; only gathered rows
    # ever reach VMEM.
    emb_pad = jnp.zeros((VOCAB, HPAD), jnp.float32).at[:, :H].set(
        emb_table.astype(jnp.float32))
    w_pad = jnp.zeros((HPAD, TPAD), jnp.float32).at[:H, :T].set(
        fc_w.astype(jnp.float32))
    b_pad = jnp.zeros((1, TPAD), jnp.float32).at[0, :T].set(
        fc_b.astype(jnp.float32))

    ids_sm = input_ids.astype(jnp.int32)        # -> SMEM (gather indices)
    ids_row = ids_sm.reshape(B, 1, S)           # -> VMEM (vectorized mask)

    kernel = functools.partial(_fused_forward_kernel,
                               start_tok=start_tok, end_tok=end_tok,
                               seq_len=S, ts=TS)

    # VMEM budget: resident fc weights + double-buffered per-step tiles + slack.
    tile_bytes = 2 * (1 * 1 * S * 4) + TS * TPAD * 4 + TS * HPAD * 4
    vmem_limit = min(max(4 * (HPAD * TPAD * 4 + TPAD * 4 + 2 * tile_bytes),
                         4 * 1024 * 1024), 32 * 1024 * 1024)

    grid_spec = pltpu.PrefetchScalarGridSpec(
        num_scalar_prefetch=1,
        grid=grid,
        in_specs=[
            pl.BlockSpec((1, 1, S), lambda b, t, ids: (b, 0, 0)),    # ids row
            pl.BlockSpec(memory_space=pl.ANY),                       # emb (HBM)
            pl.BlockSpec((HPAD, TPAD), lambda b, t, ids: (0, 0)),    # fc W (resident)
            pl.BlockSpec((1, TPAD), lambda b, t, ids: (0, 0)),       # fc bias (resident)
        ],
        out_specs=[
            pl.BlockSpec((1, 1, S), lambda b, t, ids: (b, 0, 0)),      # mask
            pl.BlockSpec((1, TS, TPAD), lambda b, t, ids: (b, t, 0)),  # logits
        ],
        scratch_shapes=[
            pltpu.VMEM((TS, HPAD), jnp.float32),     # gathered hidden tile
            pltpu.SemaphoreType.DMA((1,)),           # gather semaphore
        ],
    )

    mask3d, out_pad = pl.pallas_call(
        kernel,
        grid_spec=grid_spec,
        out_shape=(jax.ShapeDtypeStruct((B, 1, S), jnp.int32),
                   jax.ShapeDtypeStruct((B, S, TPAD), jnp.float32)),
        compiler_params=pltpu.CompilerParams(
            dimension_semantics=("parallel", "arbitrary"),
            vmem_limit_bytes=vmem_limit),
    )(ids_sm, ids_row, emb_pad, w_pad, b_pad)

    logits = out_pad[:, :, :T]          # only the TPAD->T lane-padding slice
    mask = mask3d.reshape(B, S)
    return logits, mask


if __name__ == "__main__":
    # small shapes consistent with the module's forward
    B, S, H, T = 2, 16, 32, 6          # batch, seq, hidden_size, n_target_cols
    VOCAB = 64
    START_TOK, END_TOK = 1, 2
    INIT_RANGE = 0.02                  # backbone_config.initializer_range

    key = jax.random.PRNGKey(0)
    k_ids, k_emb, k_fc = jax.random.split(key, 3)

    # deterministic example inputs
    input_ids = jax.random.randint(k_ids, (B, S), 4, VOCAB, dtype=jnp.int32)
    input_ids = input_ids.at[0, 2].set(START_TOK).at[0, 10].set(END_TOK)
    input_ids = input_ids.at[1, 0].set(START_TOK).at[1, 5].set(END_TOK)

    # deterministic parameters (normal(0, initializer_range), zero bias)
    emb_table = jax.random.normal(k_emb, (VOCAB, H), jnp.float32) * INIT_RANGE
    fc_w = jax.random.normal(k_fc, (H, T), jnp.float32) * INIT_RANGE
    fc_b = jnp.zeros((T,), jnp.float32)

    fwd = jax.jit(custom_model2_forward, static_argnums=(4, 5))
    logits, mask = fwd(input_ids, emb_table, fc_w, fc_b, START_TOK, END_TOK)
    jax.block_until_ready((logits, mask))

    # plain-JAX reference (same span-mask semantics as create_attention_masks)
    pos = jnp.arange(S)[None, :]
    start_i = jnp.min(jnp.where(input_ids == START_TOK, pos, S), axis=1, keepdims=True)
    end_i = jnp.min(jnp.where(input_ids == END_TOK, pos, S), axis=1, keepdims=True)
    found = (jnp.any(input_ids == START_TOK, axis=1, keepdims=True)
             & jnp.any(input_ids == END_TOK, axis=1, keepdims=True))
    ref_mask = ((pos >= start_i) & (pos <= end_i) & found).astype(jnp.int32)
    ref_hidden = jnp.take(emb_table, input_ids, axis=0) * ref_mask[..., None]
    ref_logits = jnp.einsum("bsh,ht->bst", ref_hidden, fc_w,
                            precision=jax.lax.Precision.HIGHEST) + fc_b

    assert jnp.array_equal(mask, ref_mask)
    assert jnp.allclose(logits, ref_logits, atol=1e-5, rtol=1e-5)

    print("KERNEL_OK")
</pallas_src>

<mosaic_0001>
module attributes {stable_mosaic.version = 11 : i64} {
  func.func @_fused_forward_kernel(%arg0: i32, %arg1: i32, %arg2: memref<2x16xi32, #tpu.memory_space<smem>>, %arg3: memref<1x1x16xi32, #tpu.memory_space<vmem>>, %arg4: memref<64x128xf32, #tpu.memory_space<any>>, %arg5: memref<128x128xf32, #tpu.memory_space<vmem>>, %arg6: memref<1x128xf32, #tpu.memory_space<vmem>>, %arg7: memref<1x1x16xi32, #tpu.memory_space<vmem>>, %arg8: memref<1x16x128xf32, #tpu.memory_space<vmem>>, %arg9: memref<16x128xf32, #tpu.memory_space<vmem>>, %arg10: memref<1x!tpu.dma_semaphore, #tpu.memory_space<semaphore_mem>>) attributes {dimension_semantics = [#tpu.dimension_semantics<parallel>, #tpu.dimension_semantics<arbitrary>], iteration_bounds = array<i64: 2, 1>, scalar_prefetch = 1 : i64, scratch_operands = 2 : i64, tpu.core_type = #tpu.core_type<tc>, window_params = [{transform_indices = @transform_0, window_bounds = array<i64: 1, 1, 16>}, {}, {pipeline_mode = #tpu.pipeline_mode<synchronous>, transform_indices = @transform_2, window_bounds = array<i64: 128, 128>}, {pipeline_mode = #tpu.pipeline_mode<synchronous>, transform_indices = @transform_3, window_bounds = array<i64: 1, 128>}, {transform_indices = @transform_4, window_bounds = array<i64: 1, 1, 16>}, {transform_indices = @transform_5, window_bounds = array<i64: 1, 16, 128>}]} {
    %c16_i32 = arith.constant 16 : i32
    %0 = arith.muli %arg1, %c16_i32 : i32
    %c0_i32 = arith.constant 0 : i32
    %1 = arith.addi %0, %c0_i32 : i32
    %2 = arith.index_cast %arg0 : i32 to index
    %3 = arith.index_cast %1 : i32 to index
    %4 = memref.load %arg2[%2, %3] : memref<2x16xi32, #tpu.memory_space<smem>>
    %c0_i32_0 = arith.constant 0 : i32
    %c0_i32_1 = arith.constant 0 : i32
    %5 = tpu.memref_slice %arg4[%4, %c0_i32_1] : memref<64x128xf32, #tpu.memory_space<any>> -> memref<1x128xf32, #tpu.memory_space<any>>
    %c0_i32_2 = arith.constant 0 : i32
    %c0_i32_3 = arith.constant 0 : i32
    %6 = tpu.memref_slice %arg9[%c0_i32_2, %c0_i32_3] : memref<16x128xf32, #tpu.memory_space<vmem>> -> memref<1x128xf32, #tpu.memory_space<vmem>>
    %7 = tpu.memref_slice %arg10[%c0_i32_0] : memref<1x!tpu.dma_semaphore, #tpu.memory_space<semaphore_mem>> -> memref<1x!tpu.dma_semaphore, #tpu.memory_space<semaphore_mem>>
    %8 = tpu.memref_squeeze %7 : memref<1x!tpu.dma_semaphore, #tpu.memory_space<semaphore_mem>> -> memref<!tpu.dma_semaphore, #tpu.memory_space<semaphore_mem>>
    tpu.enqueue_dma source(%5 : memref<1x128xf32, #tpu.memory_space<any>>) target(%6 : memref<1x128xf32, #tpu.memory_space<vmem>>) target_semaphore(%8 : memref<!tpu.dma_semaphore, #tpu.memory_space<semaphore_mem>>)
    %c1_i32 = arith.constant 1 : i32
    %9 = arith.addi %0, %c1_i32 : i32
    %10 = arith.index_cast %arg0 : i32 to index
    %11 = arith.index_cast %9 : i32 to index
    %12 = memref.load %arg2[%10, %11] : memref<2x16xi32, #tpu.memory_space<smem>>
    %c0_i32_4 = arith.constant 0 : i32
    %c0_i32_5 = arith.constant 0 : i32
    %13 = tpu.memref_slice %arg4[%12, %c0_i32_5] : memref<64x128xf32, #tpu.memory_space<any>> -> memref<1x128xf32, #tpu.memory_space<any>>
    %c1_i32_6 = arith.constant 1 : i32
    %c0_i32_7 = arith.constant 0 : i32
    %14 = tpu.memref_slice %arg9[%c1_i32_6, %c0_i32_7] : memref<16x128xf32, #tpu.memory_space<vmem>> -> memref<1x128xf32, #tpu.memory_space<vmem>>
    %15 = tpu.memref_slice %arg10[%c0_i32_4] : memref<1x!tpu.dma_semaphore, #tpu.memory_space<semaphore_mem>> -> memref<1x!tpu.dma_semaphore, #tpu.memory_space<semaphore_mem>>
    %16 = tpu.memref_squeeze %15 : memref<1x!tpu.dma_semaphore, #tpu.memory_space<semaphore_mem>> -> memref<!tpu.dma_semaphore, #tpu.memory_space<semaphore_mem>>
    tpu.enqueue_dma source(%13 : memref<1x128xf32, #tpu.memory_space<any>>) target(%14 : memref<1x128xf32, #tpu.memory_space<vmem>>) target_semaphore(%16 : memref<!tpu.dma_semaphore, #tpu.memory_space<semaphore_mem>>)
    %c2_i32 = arith.constant 2 : i32
    %17 = arith.addi %0, %c2_i32 : i32
    %18 = arith.index_cast %arg0 : i32 to index
    %19 = arith.index_cast %17 : i32 to index
    %20 = memref.load %arg2[%18, %19] : memref<2x16xi32, #tpu.memory_space<smem>>
    %c0_i32_8 = arith.constant 0 : i32
    %c0_i32_9 = arith.constant 0 : i32
    %21 = tpu.memref_slice %arg4[%20, %c0_i32_9] : memref<64x128xf32, #tpu.memory_space<any>> -> memref<1x128xf32, #tpu.memory_space<any>>
    %c2_i32_10 = arith.constant 2 : i32
    %c0_i32_11 = arith.constant 0 : i32
    %22 = tpu.memref_slice %arg9[%c2_i32_10, %c0_i32_11] : memref<16x128xf32, #tpu.memory_space<vmem>> -> memref<1x128xf32, #tpu.memory_space<vmem>>
    %23 = tpu.memref_slice %arg10[%c0_i32_8] : memref<1x!tpu.dma_semaphore, #tpu.memory_space<semaphore_mem>> -> memref<1x!tpu.dma_semaphore, #tpu.memory_space<semaphore_mem>>
    %24 = tpu.memref_squeeze %23 : memref<1x!tpu.dma_semaphore, #tpu.memory_space<semaphore_mem>> -> memref<!tpu.dma_semaphore, #tpu.memory_space<semaphore_mem>>
    tpu.enqueue_dma source(%21 : memref<1x128xf32, #tpu.memory_space<any>>) target(%22 : memref<1x128xf32, #tpu.memory_space<vmem>>) target_semaphore(%24 : memref<!tpu.dma_semaphore, #tpu.memory_space<semaphore_mem>>)
    %c3_i32 = arith.constant 3 : i32
    %25 = arith.addi %0, %c3_i32 : i32
    %26 = arith.index_cast %arg0 : i32 to index
    %27 = arith.index_cast %25 : i32 to index
    %28 = memref.load %arg2[%26, %27] : memref<2x16xi32, #tpu.memory_space<smem>>
    %c0_i32_12 = arith.constant 0 : i32
    %c0_i32_13 = arith.constant 0 : i32
    %29 = tpu.memref_slice %arg4[%28, %c0_i32_13] : memref<64x128xf32, #tpu.memory_space<any>> -> memref<1x128xf32, #tpu.memory_space<any>>
    %c3_i32_14 = arith.constant 3 : i32
    %c0_i32_15 = arith.constant 0 : i32
    %30 = tpu.memref_slice %arg9[%c3_i32_14, %c0_i32_15] : memref<16x128xf32, #tpu.memory_space<vmem>> -> memref<1x128xf32, #tpu.memory_space<vmem>>
    %31 = tpu.memref_slice %arg10[%c0_i32_12] : memref<1x!tpu.dma_semaphore, #tpu.memory_space<semaphore_mem>> -> memref<1x!tpu.dma_semaphore, #tpu.memory_space<semaphore_mem>>
    %32 = tpu.memref_squeeze %31 : memref<1x!tpu.dma_semaphore, #tpu.memory_space<semaphore_mem>> -> memref<!tpu.dma_semaphore, #tpu.memory_space<semaphore_mem>>
    tpu.enqueue_dma source(%29 : memref<1x128xf32, #tpu.memory_space<any>>) target(%30 : memref<1x128xf32, #tpu.memory_space<vmem>>) target_semaphore(%32 : memref<!tpu.dma_semaphore, #tpu.memory_space<semaphore_mem>>)
    %c4_i32 = arith.constant 4 : i32
    %33 = arith.addi %0, %c4_i32 : i32
    %34 = arith.index_cast %arg0 : i32 to index
    %35 = arith.index_cast %33 : i32 to index
    %36 = memref.load %arg2[%34, %35] : memref<2x16xi32, #tpu.memory_space<smem>>
    %c0_i32_16 = arith.constant 0 : i32
    %c0_i32_17 = arith.constant 0 : i32
    %37 = tpu.memref_slice %arg4[%36, %c0_i32_17] : memref<64x128xf32, #tpu.memory_space<any>> -> memref<1x128xf32, #tpu.memory_space<any>>
    %c4_i32_18 = arith.constant 4 : i32
    %c0_i32_19 = arith.constant 0 : i32
    %38 = tpu.memref_slice %arg9[%c4_i32_18, %c0_i32_19] : memref<16x128xf32, #tpu.memory_space<vmem>> -> memref<1x128xf32, #tpu.memory_space<vmem>>
    %39 = tpu.memref_slice %arg10[%c0_i32_16] : memref<1x!tpu.dma_semaphore, #tpu.memory_space<semaphore_mem>> -> memref<1x!tpu.dma_semaphore, #tpu.memory_space<semaphore_mem>>
    %40 = tpu.memref_squeeze %39 : memref<1x!tpu.dma_semaphore, #tpu.memory_space<semaphore_mem>> -> memref<!tpu.dma_semaphore, #tpu.memory_space<semaphore_mem>>
    tpu.enqueue_dma source(%37 : memref<1x128xf32, #tpu.memory_space<any>>) target(%38 : memref<1x128xf32, #tpu.memory_space<vmem>>) target_semaphore(%40 : memref<!tpu.dma_semaphore, #tpu.memory_space<semaphore_mem>>)
    %c5_i32 = arith.constant 5 : i32
    %41 = arith.addi %0, %c5_i32 : i32
    %42 = arith.index_cast %arg0 : i32 to index
    %43 = arith.index_cast %41 : i32 to index
    %44 = memref.load %arg2[%42, %43] : memref<2x16xi32, #tpu.memory_space<smem>>
    %c0_i32_20 = arith.constant 0 : i32
    %c0_i32_21 = arith.constant 0 : i32
    %45 = tpu.memref_slice %arg4[%44, %c0_i32_21] : memref<64x128xf32, #tpu.memory_space<any>> -> memref<1x128xf32, #tpu.memory_space<any>>
    %c5_i32_22 = arith.constant 5 : i32
    %c0_i32_23 = arith.constant 0 : i32
    %46 = tpu.memref_slice %arg9[%c5_i32_22, %c0_i32_23] : memref<16x128xf32, #tpu.memory_space<vmem>> -> memref<1x128xf32, #tpu.memory_space<vmem>>
    %47 = tpu.memref_slice %arg10[%c0_i32_20] : memref<1x!tpu.dma_semaphore, #tpu.memory_space<semaphore_mem>> -> memref<1x!tpu.dma_semaphore, #tpu.memory_space<semaphore_mem>>
    %48 = tpu.memref_squeeze %47 : memref<1x!tpu.dma_semaphore, #tpu.memory_space<semaphore_mem>> -> memref<!tpu.dma_semaphore, #tpu.memory_space<semaphore_mem>>
    tpu.enqueue_dma source(%45 : memref<1x128xf32, #tpu.memory_space<any>>) target(%46 : memref<1x128xf32, #tpu.memory_space<vmem>>) target_semaphore(%48 : memref<!tpu.dma_semaphore, #tpu.memory_space<semaphore_mem>>)
    %c6_i32 = arith.constant 6 : i32
    %49 = arith.addi %0, %c6_i32 : i32
    %50 = arith.index_cast %arg0 : i32 to index
    %51 = arith.index_cast %49 : i32 to index
    %52 = memref.load %arg2[%50, %51] : memref<2x16xi32, #tpu.memory_space<smem>>
    %c0_i32_24 = arith.constant 0 : i32
    %c0_i32_25 = arith.constant 0 : i32
    %53 = tpu.memref_slice %arg4[%52, %c0_i32_25] : memref<64x128xf32, #tpu.memory_space<any>> -> memref<1x128xf32, #tpu.memory_space<any>>
    %c6_i32_26 = arith.constant 6 : i32
    %c0_i32_27 = arith.constant 0 : i32
    %54 = tpu.memref_slice %arg9[%c6_i32_26, %c0_i32_27] : memref<16x128xf32, #tpu.memory_space<vmem>> -> memref<1x128xf32, #tpu.memory_space<vmem>>
    %55 = tpu.memref_slice %arg10[%c0_i32_24] : memref<1x!tpu.dma_semaphore, #tpu.memory_space<semaphore_mem>> -> memref<1x!tpu.dma_semaphore, #tpu.memory_space<semaphore_mem>>
    %56 = tpu.memref_squeeze %55 : memref<1x!tpu.dma_semaphore, #tpu.memory_space<semaphore_mem>> -> memref<!tpu.dma_semaphore, #tpu.memory_space<semaphore_mem>>
    tpu.enqueue_dma source(%53 : memref<1x128xf32, #tpu.memory_space<any>>) target(%54 : memref<1x128xf32, #tpu.memory_space<vmem>>) target_semaphore(%56 : memref<!tpu.dma_semaphore, #tpu.memory_space<semaphore_mem>>)
    %c7_i32 = arith.constant 7 : i32
    %57 = arith.addi %0, %c7_i32 : i32
    %58 = arith.index_cast %arg0 : i32 to index
    %59 = arith.index_cast %57 : i32 to index
    %60 = memref.load %arg2[%58, %59] : memref<2x16xi32, #tpu.memory_space<smem>>
    %c0_i32_28 = arith.constant 0 : i32
    %c0_i32_29 = arith.constant 0 : i32
    %61 = tpu.memref_slice %arg4[%60, %c0_i32_29] : memref<64x128xf32, #tpu.memory_space<any>> -> memref<1x128xf32, #tpu.memory_space<any>>
    %c7_i32_30 = arith.constant 7 : i32
    %c0_i32_31 = arith.constant 0 : i32
    %62 = tpu.memref_slice %arg9[%c7_i32_30, %c0_i32_31] : memref<16x128xf32, #tpu.memory_space<vmem>> -> memref<1x128xf32, #tpu.memory_space<vmem>>
    %63 = tpu.memref_slice %arg10[%c0_i32_28] : memref<1x!tpu.dma_semaphore, #tpu.memory_space<semaphore_mem>> -> memref<1x!tpu.dma_semaphore, #tpu.memory_space<semaphore_mem>>
    %64 = tpu.memref_squeeze %63 : memref<1x!tpu.dma_semaphore, #tpu.memory_space<semaphore_mem>> -> memref<!tpu.dma_semaphore, #tpu.memory_space<semaphore_mem>>
    tpu.enqueue_dma source(%61 : memref<1x128xf32, #tpu.memory_space<any>>) target(%62 : memref<1x128xf32, #tpu.memory_space<vmem>>) target_semaphore(%64 : memref<!tpu.dma_semaphore, #tpu.memory_space<semaphore_mem>>)
    %c8_i32 = arith.constant 8 : i32
    %65 = arith.addi %0, %c8_i32 : i32
    %66 = arith.index_cast %arg0 : i32 to index
    %67 = arith.index_cast %65 : i32 to index
    %68 = memref.load %arg2[%66, %67] : memref<2x16xi32, #tpu.memory_space<smem>>
    %c0_i32_32 = arith.constant 0 : i32
    %c0_i32_33 = arith.constant 0 : i32
    %69 = tpu.memref_slice %arg4[%68, %c0_i32_33] : memref<64x128xf32, #tpu.memory_space<any>> -> memref<1x128xf32, #tpu.memory_space<any>>
    %c8_i32_34 = arith.constant 8 : i32
    %c0_i32_35 = arith.constant 0 : i32
    %70 = tpu.memref_slice %arg9[%c8_i32_34, %c0_i32_35] : memref<16x128xf32, #tpu.memory_space<vmem>> -> memref<1x128xf32, #tpu.memory_space<vmem>>
    %71 = tpu.memref_slice %arg10[%c0_i32_32] : memref<1x!tpu.dma_semaphore, #tpu.memory_space<semaphore_mem>> -> memref<1x!tpu.dma_semaphore, #tpu.memory_space<semaphore_mem>>
    %72 = tpu.memref_squeeze %71 : memref<1x!tpu.dma_semaphore, #tpu.memory_space<semaphore_mem>> -> memref<!tpu.dma_semaphore, #tpu.memory_space<semaphore_mem>>
    tpu.enqueue_dma source(%69 : memref<1x128xf32, #tpu.memory_space<any>>) target(%70 : memref<1x128xf32, #tpu.memory_space<vmem>>) target_semaphore(%72 : memref<!tpu.dma_semaphore, #tpu.memory_space<semaphore_mem>>)
    %c9_i32 = arith.constant 9 : i32
    %73 = arith.addi %0, %c9_i32 : i32
    %74 = arith.index_cast %arg0 : i32 to index
    %75 = arith.index_cast %73 : i32 to index
    %76 = memref.load %arg2[%74, %75] : memref<2x16xi32, #tpu.memory_space<smem>>
    %c0_i32_36 = arith.constant 0 : i32
    %c0_i32_37 = arith.constant 0 : i32
    %77 = tpu.memref_slice %arg4[%76, %c0_i32_37] : memref<64x128xf32, #tpu.memory_space<any>> -> memref<1x128xf32, #tpu.memory_space<any>>
    %c9_i32_38 = arith.constant 9 : i32
    %c0_i32_39 = arith.constant 0 : i32
    %78 = tpu.memref_slice %arg9[%c9_i32_38, %c0_i32_39] : memref<16x128xf32, #tpu.memory_space<vmem>> -> memref<1x128xf32, #tpu.memory_space<vmem>>
    %79 = tpu.memref_slice %arg10[%c0_i32_36] : memref<1x!tpu.dma_semaphore, #tpu.memory_space<semaphore_mem>> -> memref<1x!tpu.dma_semaphore, #tpu.memory_space<semaphore_mem>>
    %80 = tpu.memref_squeeze %79 : memref<1x!tpu.dma_semaphore, #tpu.memory_space<semaphore_mem>> -> memref<!tpu.dma_semaphore, #tpu.memory_space<semaphore_mem>>
    tpu.enqueue_dma source(%77 : memref<1x128xf32, #tpu.memory_space<any>>) target(%78 : memref<1x128xf32, #tpu.memory_space<vmem>>) target_semaphore(%80 : memref<!tpu.dma_semaphore, #tpu.memory_space<semaphore_mem>>)
    %c10_i32 = arith.constant 10 : i32
    %81 = arith.addi %0, %c10_i32 : i32
    %82 = arith.index_cast %arg0 : i32 to index
    %83 = arith.index_cast %81 : i32 to index
    %84 = memref.load %arg2[%82, %83] : memref<2x16xi32, #tpu.memory_space<smem>>
    %c0_i32_40 = arith.constant 0 : i32
    %c0_i32_41 = arith.constant 0 : i32
    %85 = tpu.memref_slice %arg4[%84, %c0_i32_41] : memref<64x128xf32, #tpu.memory_space<any>> -> memref<1x128xf32, #tpu.memory_space<any>>
    %c10_i32_42 = arith.constant 10 : i32
    %c0_i32_43 = arith.constant 0 : i32
    %86 = tpu.memref_slice %arg9[%c10_i32_42, %c0_i32_43] : memref<16x128xf32, #tpu.memory_space<vmem>> -> memref<1x128xf32, #tpu.memory_space<vmem>>
    %87 = tpu.memref_slice %arg10[%c0_i32_40] : memref<1x!tpu.dma_semaphore, #tpu.memory_space<semaphore_mem>> -> memref<1x!tpu.dma_semaphore, #tpu.memory_space<semaphore_mem>>
    %88 = tpu.memref_squeeze %87 : memref<1x!tpu.dma_semaphore, #tpu.memory_space<semaphore_mem>> -> memref<!tpu.dma_semaphore, #tpu.memory_space<semaphore_mem>>
    tpu.enqueue_dma source(%85 : memref<1x128xf32, #tpu.memory_space<any>>) target(%86 : memref<1x128xf32, #tpu.memory_space<vmem>>) target_semaphore(%88 : memref<!tpu.dma_semaphore, #tpu.memory_space<semaphore_mem>>)
    %c11_i32 = arith.constant 11 : i32
    %89 = arith.addi %0, %c11_i32 : i32
    %90 = arith.index_cast %arg0 : i32 to index
    %91 = arith.index_cast %89 : i32 to index
    %92 = memref.load %arg2[%90, %91] : memref<2x16xi32, #tpu.memory_space<smem>>
    %c0_i32_44 = arith.constant 0 : i32
    %c0_i32_45 = arith.constant 0 : i32
    %93 = tpu.memref_slice %arg4[%92, %c0_i32_45] : memref<64x128xf32, #tpu.memory_space<any>> -> memref<1x128xf32, #tpu.memory_space<any>>
    %c11_i32_46 = arith.constant 11 : i32
    %c0_i32_47 = arith.constant 0 : i32
    %94 = tpu.memref_slice %arg9[%c11_i32_46, %c0_i32_47] : memref<16x128xf32, #tpu.memory_space<vmem>> -> memref<1x128xf32, #tpu.memory_space<vmem>>
    %95 = tpu.memref_slice %arg10[%c0_i32_44] : memref<1x!tpu.dma_semaphore, #tpu.memory_space<semaphore_mem>> -> memref<1x!tpu.dma_semaphore, #tpu.memory_space<semaphore_mem>>
    %96 = tpu.memref_squeeze %95 : memref<1x!tpu.dma_semaphore, #tpu.memory_space<semaphore_mem>> -> memref<!tpu.dma_semaphore, #tpu.memory_space<semaphore_mem>>
    tpu.enqueue_dma source(%93 : memref<1x128xf32, #tpu.memory_space<any>>) target(%94 : memref<1x128xf32, #tpu.memory_space<vmem>>) target_semaphore(%96 : memref<!tpu.dma_semaphore, #tpu.memory_space<semaphore_mem>>)
    %c12_i32 = arith.constant 12 : i32
    %97 = arith.addi %0, %c12_i32 : i32
    %98 = arith.index_cast %arg0 : i32 to index
    %99 = arith.index_cast %97 : i32 to index
    %100 = memref.load %arg2[%98, %99] : memref<2x16xi32, #tpu.memory_space<smem>>
    %c0_i32_48 = arith.constant 0 : i32
    %c0_i32_49 = arith.constant 0 : i32
    %101 = tpu.memref_slice %arg4[%100, %c0_i32_49] : memref<64x128xf32, #tpu.memory_space<any>> -> memref<1x128xf32, #tpu.memory_space<any>>
    %c12_i32_50 = arith.constant 12 : i32
    %c0_i32_51 = arith.constant 0 : i32
    %102 = tpu.memref_slice %arg9[%c12_i32_50, %c0_i32_51] : memref<16x128xf32, #tpu.memory_space<vmem>> -> memref<1x128xf32, #tpu.memory_space<vmem>>
    %103 = tpu.memref_slice %arg10[%c0_i32_48] : memref<1x!tpu.dma_semaphore, #tpu.memory_space<semaphore_mem>> -> memref<1x!tpu.dma_semaphore, #tpu.memory_space<semaphore_mem>>
    %104 = tpu.memref_squeeze %103 : memref<1x!tpu.dma_semaphore, #tpu.memory_space<semaphore_mem>> -> memref<!tpu.dma_semaphore, #tpu.memory_space<semaphore_mem>>
    tpu.enqueue_dma source(%101 : memref<1x128xf32, #tpu.memory_space<any>>) target(%102 : memref<1x128xf32, #tpu.memory_space<vmem>>) target_semaphore(%104 : memref<!tpu.dma_semaphore, #tpu.memory_space<semaphore_mem>>)
    %c13_i32 = arith.constant 13 : i32
    %105 = arith.addi %0, %c13_i32 : i32
    %106 = arith.index_cast %arg0 : i32 to index
    %107 = arith.index_cast %105 : i32 to index
    %108 = memref.load %arg2[%106, %107] : memref<2x16xi32, #tpu.memory_space<smem>>
    %c0_i32_52 = arith.constant 0 : i32
    %c0_i32_53 = arith.constant 0 : i32
    %109 = tpu.memref_slice %arg4[%108, %c0_i32_53] : memref<64x128xf32, #tpu.memory_space<any>> -> memref<1x128xf32, #tpu.memory_space<any>>
    %c13_i32_54 = arith.constant 13 : i32
    %c0_i32_55 = arith.constant 0 : i32
    %110 = tpu.memref_slice %arg9[%c13_i32_54, %c0_i32_55] : memref<16x128xf32, #tpu.memory_space<vmem>> -> memref<1x128xf32, #tpu.memory_space<vmem>>
    %111 = tpu.memref_slice %arg10[%c0_i32_52] : memref<1x!tpu.dma_semaphore, #tpu.memory_space<semaphore_mem>> -> memref<1x!tpu.dma_semaphore, #tpu.memory_space<semaphore_mem>>
    %112 = tpu.memref_squeeze %111 : memref<1x!tpu.dma_semaphore, #tpu.memory_space<semaphore_mem>> -> memref<!tpu.dma_semaphore, #tpu.memory_space<semaphore_mem>>
    tpu.enqueue_dma source(%109 : memref<1x128xf32, #tpu.memory_space<any>>) target(%110 : memref<1x128xf32, #tpu.memory_space<vmem>>) target_semaphore(%112 : memref<!tpu.dma_semaphore, #tpu.memory_space<semaphore_mem>>)
    %c14_i32 = arith.constant 14 : i32
    %113 = arith.addi %0, %c14_i32 : i32
    %114 = arith.index_cast %arg0 : i32 to index
    %115 = arith.index_cast %113 : i32 to index
    %116 = memref.load %arg2[%114, %115] : memref<2x16xi32, #tpu.memory_space<smem>>
    %c0_i32_56 = arith.constant 0 : i32
    %c0_i32_57 = arith.constant 0 : i32
    %117 = tpu.memref_slice %arg4[%116, %c0_i32_57] : memref<64x128xf32, #tpu.memory_space<any>> -> memref<1x128xf32, #tpu.memory_space<any>>
    %c14_i32_58 = arith.constant 14 : i32
    %c0_i32_59 = arith.constant 0 : i32
    %118 = tpu.memref_slice %arg9[%c14_i32_58, %c0_i32_59] : memref<16x128xf32, #tpu.memory_space<vmem>> -> memref<1x128xf32, #tpu.memory_space<vmem>>
    %119 = tpu.memref_slice %arg10[%c0_i32_56] : memref<1x!tpu.dma_semaphore, #tpu.memory_space<semaphore_mem>> -> memref<1x!tpu.dma_semaphore, #tpu.memory_space<semaphore_mem>>
    %120 = tpu.memref_squeeze %119 : memref<1x!tpu.dma_semaphore, #tpu.memory_space<semaphore_mem>> -> memref<!tpu.dma_semaphore, #tpu.memory_space<semaphore_mem>>
    tpu.enqueue_dma source(%117 : memref<1x128xf32, #tpu.memory_space<any>>) target(%118 : memref<1x128xf32, #tpu.memory_space<vmem>>) target_semaphore(%120 : memref<!tpu.dma_semaphore, #tpu.memory_space<semaphore_mem>>)
    %c15_i32 = arith.constant 15 : i32
    %121 = arith.addi %0, %c15_i32 : i32
    %122 = arith.index_cast %arg0 : i32 to index
    %123 = arith.index_cast %121 : i32 to index
    %124 = memref.load %arg2[%122, %123] : memref<2x16xi32, #tpu.memory_space<smem>>
    %c0_i32_60 = arith.constant 0 : i32
    %c0_i32_61 = arith.constant 0 : i32
    %125 = tpu.memref_slice %arg4[%124, %c0_i32_61] : memref<64x128xf32, #tpu.memory_space<any>> -> memref<1x128xf32, #tpu.memory_space<any>>
    %c15_i32_62 = arith.constant 15 : i32
    %c0_i32_63 = arith.constant 0 : i32
    %126 = tpu.memref_slice %arg9[%c15_i32_62, %c0_i32_63] : memref<16x128xf32, #tpu.memory_space<vmem>> -> memref<1x128xf32, #tpu.memory_space<vmem>>
    %127 = tpu.memref_slice %arg10[%c0_i32_60] : memref<1x!tpu.dma_semaphore, #tpu.memory_space<semaphore_mem>> -> memref<1x!tpu.dma_semaphore, #tpu.memory_space<semaphore_mem>>
    %128 = tpu.memref_squeeze %127 : memref<1x!tpu.dma_semaphore, #tpu.memory_space<semaphore_mem>> -> memref<!tpu.dma_semaphore, #tpu.memory_space<semaphore_mem>>
    tpu.enqueue_dma source(%125 : memref<1x128xf32, #tpu.memory_space<any>>) target(%126 : memref<1x128xf32, #tpu.memory_space<vmem>>) target_semaphore(%128 : memref<!tpu.dma_semaphore, #tpu.memory_space<semaphore_mem>>)
    %c0 = arith.constant 0 : index
    %c0_64 = arith.constant 0 : index
    %c0_65 = arith.constant 0 : index
    %129 = vector.load %arg3[%c0, %c0_64, %c0_65] : memref<1x1x16xi32, #tpu.memory_space<vmem>>, vector<1x1x16xi32>
    %130 = tpu.iota {dimensions = array<i32: 2>} : vector<1x1x16xi32>
    %c1_i32_66 = arith.constant 1 : i32
    %131 = vector.broadcast %c1_i32_66 : i32 to vector<1x1x16xi32>
    %132 = arith.cmpi eq, %129, %131 : vector<1x1x16xi32>
    %c2_i32_67 = arith.constant 2 : i32
    %133 = vector.broadcast %c2_i32_67 : i32 to vector<1x1x16xi32>
    %134 = arith.cmpi eq, %129, %133 : vector<1x1x16xi32>
    %c16_i32_68 = arith.constant 16 : i32
    %135 = vector.broadcast %c16_i32_68 : i32 to vector<1x1x16xi32>
    %136 = arith.select %132, %130, %135 : vector<1x1x16xi1>, vector<1x1x16xi32>
    %cst = arith.constant dense<2147483647> : vector<1x1xi32>
    %137 = vector.multi_reduction <minsi>, %136, %cst [2] : vector<1x1x16xi32> to vector<1x1xi32>
    %138 = vector.shape_cast %137 : vector<1x1xi32> to vector<1x1x1xi32>
    %c16_i32_69 = arith.constant 16 : i32
    %139 = vector.broadcast %c16_i32_69 : i32 to vector<1x1x16xi32>
    %140 = arith.select %134, %130, %139 : vector<1x1x16xi1>, vector<1x1x16xi32>
    %cst_70 = arith.constant dense<2147483647> : vector<1x1xi32>
    %141 = vector.multi_reduction <minsi>, %140, %cst_70 [2] : vector<1x1x16xi32> to vector<1x1xi32>
    %142 = vector.shape_cast %141 : vector<1x1xi32> to vector<1x1x1xi32>
    %143 = arith.extui %132 : vector<1x1x16xi1> to vector<1x1x16xi32>
    %cst_71 = arith.constant dense<-2147483648> : vector<1x1xi32>
    %144 = vector.multi_reduction <maxsi>, %143, %cst_71 [2] : vector<1x1x16xi32> to vector<1x1xi32>
    %145 = vector.shape_cast %144 : vector<1x1xi32> to vector<1x1x1xi32>
    %146 = arith.extui %134 : vector<1x1x16xi1> to vector<1x1x16xi32>
    %cst_72 = arith.constant dense<-2147483648> : vector<1x1xi32>
    %147 = vector.multi_reduction <maxsi>, %146, %cst_72 [2] : vector<1x1x16xi32> to vector<1x1xi32>
    %148 = vector.shape_cast %147 : vector<1x1xi32> to vector<1x1x1xi32>
    %149 = arith.muli %145, %148 : vector<1x1x1xi32>
    %150 = vector.broadcast %138 : vector<1x1x1xi32> to vector<1x1x16xi32>
    %151 = arith.cmpi sge, %130, %150 : vector<1x1x16xi32>
    %152 = vector.broadcast %142 : vector<1x1x1xi32> to vector<1x1x16xi32>
    %153 = arith.cmpi sle, %130, %152 : vector<1x1x16xi32>
    %154 = arith.andi %151, %153 : vector<1x1x16xi1>
    %c0_i32_73 = arith.constant 0 : i32
    %155 = vector.broadcast %c0_i32_73 : i32 to vector<1x1x1xi32>
    %156 = arith.cmpi sgt, %149, %155 : vector<1x1x1xi32>
    %157 = vector.broadcast %156 : vector<1x1x1xi1> to vector<1x1x16xi1>
    %158 = arith.andi %154, %157 : vector<1x1x16xi1>
    %159 = arith.extui %158 : vector<1x1x16xi1> to vector<1x1x16xi32>
    %c0_74 = arith.constant 0 : index
    %c0_75 = arith.constant 0 : index
    %c0_76 = arith.constant 0 : index
    %160 = vector.load %arg7[%c0_74, %c0_75, %c0_76] : memref<1x1x16xi32, #tpu.memory_space<vmem>>, vector<1x1x16xi32>
    tpu.vector_store %arg7[%c0_74, %c0_75, %c0_76], %159 {strides = array<i32>} : memref<1x1x16xi32, #tpu.memory_space<vmem>>, vector<1x1x16xi32>,
    %161 = vector.shape_cast %138 : vector<1x1x1xi32> to vector<1x1xi32>
    %162 = vector.shape_cast %142 : vector<1x1x1xi32> to vector<1x1xi32>
    %163 = vector.shape_cast %149 : vector<1x1x1xi32> to vector<1x1xi32>
    %164 = tpu.iota {dimensions = array<i32: 0>} : vector<16x1xi32>
    %165 = vector.broadcast %0 : i32 to vector<16x1xi32>
    %166 = arith.addi %165, %164 : vector<16x1xi32>
    %167 = vector.broadcast %161 : vector<1x1xi32> to vector<16x1xi32>
    %168 = arith.cmpi sge, %166, %167 : vector<16x1xi32>
    %169 = vector.broadcast %162 : vector<1x1xi32> to vector<16x1xi32>
    %170 = arith.cmpi sle, %166, %169 : vector<16x1xi32>
    %171 = arith.andi %168, %170 : vector<16x1xi1>
    %c0_i32_77 = arith.constant 0 : i32
    %172 = vector.broadcast %c0_i32_77 : i32 to vector<1x1xi32>
    %173 = arith.cmpi sgt, %163, %172 : vector<1x1xi32>
    %174 = vector.broadcast %173 : vector<1x1xi1> to vector<16x1xi1>
    %175 = arith.andi %171, %174 : vector<16x1xi1>
    %176 = arith.extui %175 : vector<16x1xi1> to vector<16x1xi32>
    %177 = arith.sitofp %176 : vector<16x1xi32> to vector<16x1xf32>
    %c0_i32_78 = arith.constant 0 : i32
    %c0_i32_79 = arith.constant 0 : i32
    %c0_i32_80 = arith.constant 0 : i32
    %178 = tpu.memref_slice %arg4[%c0_i32_79, %c0_i32_80] : memref<64x128xf32, #tpu.memory_space<any>> -> memref<1x128xf32, #tpu.memory_space<any>>
    %c0_i32_81 = arith.constant 0 : i32
    %c0_i32_82 = arith.constant 0 : i32
    %179 = tpu.memref_slice %arg9[%c0_i32_81, %c0_i32_82] : memref<16x128xf32, #tpu.memory_space<vmem>> -> memref<1x128xf32, #tpu.memory_space<vmem>>
    %180 = tpu.memref_slice %arg10[%c0_i32_78] : memref<1x!tpu.dma_semaphore, #tpu.memory_space<semaphore_mem>> -> memref<1x!tpu.dma_semaphore, #tpu.memory_space<semaphore_mem>>
    %181 = tpu.memref_squeeze %180 : memref<1x!tpu.dma_semaphore, #tpu.memory_space<semaphore_mem>> -> memref<!tpu.dma_semaphore, #tpu.memory_space<semaphore_mem>>
    tpu.wait_dma2 semaphore(%181 : memref<!tpu.dma_semaphore, #tpu.memory_space<semaphore_mem>>) src(%178 : memref<1x128xf32, #tpu.memory_space<any>>) dst(%179 : memref<1x128xf32, #tpu.memory_space<vmem>>)
    %c0_i32_83 = arith.constant 0 : i32
    %c0_i32_84 = arith.constant 0 : i32
    %c0_i32_85 = arith.constant 0 : i32
    %182 = tpu.memref_slice %arg4[%c0_i32_84, %c0_i32_85] : memref<64x128xf32, #tpu.memory_space<any>> -> memref<1x128xf32, #tpu.memory_space<any>>
    %c0_i32_86 = arith.constant 0 : i32
    %c0_i32_87 = arith.constant 0 : i32
    %183 = tpu.memref_slice %arg9[%c0_i32_86, %c0_i32_87] : memref<16x128xf32, #tpu.memory_space<vmem>> -> memref<1x128xf32, #tpu.memory_space<vmem>>
    %184 = tpu.memref_slice %arg10[%c0_i32_83] : memref<1x!tpu.dma_semaphore, #tpu.memory_space<semaphore_mem>> -> memref<1x!tpu.dma_semaphore, #tpu.memory_space<semaphore_mem>>
    %185 = tpu.memref_squeeze %184 : memref<1x!tpu.dma_semaphore, #tpu.memory_space<semaphore_mem>> -> memref<!tpu.dma_semaphore, #tpu.memory_space<semaphore_mem>>
    tpu.wait_dma2 semaphore(%185 : memref<!tpu.dma_semaphore, #tpu.memory_space<semaphore_mem>>) src(%182 : memref<1x128xf32, #tpu.memory_space<any>>) dst(%183 : memref<1x128xf32, #tpu.memory_space<vmem>>)
    %c0_i32_88 = arith.constant 0 : i32
    %c0_i32_89 = arith.constant 0 : i32
    %c0_i32_90 = arith.constant 0 : i32
    %186 = tpu.memref_slice %arg4[%c0_i32_89, %c0_i32_90] : memref<64x128xf32, #tpu.memory_space<any>> -> memref<1x128xf32, #tpu.memory_space<any>>
    %c0_i32_91 = arith.constant 0 : i32
    %c0_i32_92 = arith.constant 0 : i32
    %187 = tpu.memref_slice %arg9[%c0_i32_91, %c0_i32_92] : memref<16x128xf32, #tpu.memory_space<vmem>> -> memref<1x128xf32, #tpu.memory_space<vmem>>
    %188 = tpu.memref_slice %arg10[%c0_i32_88] : memref<1x!tpu.dma_semaphore, #tpu.memory_space<semaphore_mem>> -> memref<1x!tpu.dma_semaphore, #tpu.memory_space<semaphore_mem>>
    %189 = tpu.memref_squeeze %188 : memref<1x!tpu.dma_semaphore, #tpu.memory_space<semaphore_mem>> -> memref<!tpu.dma_semaphore, #tpu.memory_space<semaphore_mem>>
    tpu.wait_dma2 semaphore(%189 : memref<!tpu.dma_semaphore, #tpu.memory_space<semaphore_mem>>) src(%186 : memref<1x128xf32, #tpu.memory_space<any>>) dst(%187 : memref<1x128xf32, #tpu.memory_space<vmem>>)
    %c0_i32_93 = arith.constant 0 : i32
    %c0_i32_94 = arith.constant 0 : i32
    %c0_i32_95 = arith.constant 0 : i32
    %190 = tpu.memref_slice %arg4[%c0_i32_94, %c0_i32_95] : memref<64x128xf32, #tpu.memory_space<any>> -> memref<1x128xf32, #tpu.memory_space<any>>
    %c0_i32_96 = arith.constant 0 : i32
    %c0_i32_97 = arith.constant 0 : i32
    %191 = tpu.memref_slice %arg9[%c0_i32_96, %c0_i32_97] : memref<16x128xf32, #tpu.memory_space<vmem>> -> memref<1x128xf32, #tpu.memory_space<vmem>>
    %192 = tpu.memref_slice %arg10[%c0_i32_93] : memref<1x!tpu.dma_semaphore, #tpu.memory_space<semaphore_mem>> -> memref<1x!tpu.dma_semaphore, #tpu.memory_space<semaphore_mem>>
    %193 = tpu.memref_squeeze %192 : memref<1x!tpu.dma_semaphore, #tpu.memory_space<semaphore_mem>> -> memref<!tpu.dma_semaphore, #tpu.memory_space<semaphore_mem>>
    tpu.wait_dma2 semaphore(%193 : memref<!tpu.dma_semaphore, #tpu.memory_space<semaphore_mem>>) src(%190 : memref<1x128xf32, #tpu.memory_space<any>>) dst(%191 : memref<1x128xf32, #tpu.memory_space<vmem>>)
    %c0_i32_98 = arith.constant 0 : i32
    %c0_i32_99 = arith.constant 0 : i32
    %c0_i32_100 = arith.constant 0 : i32
    %194 = tpu.memref_slice %arg4[%c0_i32_99, %c0_i32_100] : memref<64x128xf32, #tpu.memory_space<any>> -> memref<1x128xf32, #tpu.memory_space<any>>
    %c0_i32_101 = arith.constant 0 : i32
    %c0_i32_102 = arith.constant 0 : i32
    %195 = tpu.memref_slice %arg9[%c0_i32_101, %c0_i32_102] : memref<16x128xf32, #tpu.memory_space<vmem>> -> memref<1x128xf32, #tpu.memory_space<vmem>>
    %196 = tpu.memref_slice %arg10[%c0_i32_98] : memref<1x!tpu.dma_semaphore, #tpu.memory_space<semaphore_mem>> -> memref<1x!tpu.dma_semaphore, #tpu.memory_space<semaphore_mem>>
    %197 = tpu.memref_squeeze %196 : memref<1x!tpu.dma_semaphore, #tpu.memory_space<semaphore_mem>> -> memref<!tpu.dma_semaphore, #tpu.memory_space<semaphore_mem>>
    tpu.wait_dma2 semaphore(%197 : memref<!tpu.dma_semaphore, #tpu.memory_space<semaphore_mem>>) src(%194 : memref<1x128xf32, #tpu.memory_space<any>>) dst(%195 : memref<1x128xf32, #tpu.memory_space<vmem>>)
    %c0_i32_103 = arith.constant 0 : i32
    %c0_i32_104 = arith.constant 0 : i32
    %c0_i32_105 = arith.constant 0 : i32
    %198 = tpu.memref_slice %arg4[%c0_i32_104, %c0_i32_105] : memref<64x128xf32, #tpu.memory_space<any>> -> memref<1x128xf32, #tpu.memory_space<any>>
    %c0_i32_106 = arith.constant 0 : i32
    %c0_i32_107 = arith.constant 0 : i32
    %199 = tpu.memref_slice %arg9[%c0_i32_106, %c0_i32_107] : memref<16x128xf32, #tpu.memory_space<vmem>> -> memref<1x128xf32, #tpu.memory_space<vmem>>
    %200 = tpu.memref_slice %arg10[%c0_i32_103] : memref<1x!tpu.dma_semaphore, #tpu.memory_space<semaphore_mem>> -> memref<1x!tpu.dma_semaphore, #tpu.memory_space<semaphore_mem>>
    %201 = tpu.memref_squeeze %200 : memref<1x!tpu.dma_semaphore, #tpu.memory_space<semaphore_mem>> -> memref<!tpu.dma_semaphore, #tpu.memory_space<semaphore_mem>>
    tpu.wait_dma2 semaphore(%201 : memref<!tpu.dma_semaphore, #tpu.memory_space<semaphore_mem>>) src(%198 : memref<1x128xf32, #tpu.memory_space<any>>) dst(%199 : memref<1x128xf32, #tpu.memory_space<vmem>>)
    %c0_i32_108 = arith.constant 0 : i32
    %c0_i32_109 = arith.constant 0 : i32
    %c0_i32_110 = arith.constant 0 : i32
    %202 = tpu.memref_slice %arg4[%c0_i32_109, %c0_i32_110] : memref<64x128xf32, #tpu.memory_space<any>> -> memref<1x128xf32, #tpu.memory_space<any>>
    %c0_i32_111 = arith.constant 0 : i32
    %c0_i32_112 = arith.constant 0 : i32
    %203 = tpu.memref_slice %arg9[%c0_i32_111, %c0_i32_112] : memref<16x128xf32, #tpu.memory_space<vmem>> -> memref<1x128xf32, #tpu.memory_space<vmem>>
    %204 = tpu.memref_slice %arg10[%c0_i32_108] : memref<1x!tpu.dma_semaphore, #tpu.memory_space<semaphore_mem>> -> memref<1x!tpu.dma_semaphore, #tpu.memory_space<semaphore_mem>>
    %205 = tpu.memref_squeeze %204 : memref<1x!tpu.dma_semaphore, #tpu.memory_space<semaphore_mem>> -> memref<!tpu.dma_semaphore, #tpu.memory_space<semaphore_mem>>
    tpu.wait_dma2 semaphore(%205 : memref<!tpu.dma_semaphore, #tpu.memory_space<semaphore_mem>>) src(%202 : memref<1x128xf32, #tpu.memory_space<any>>) dst(%203 : memref<1x128xf32, #tpu.memory_space<vmem>>)
    %c0_i32_113 = arith.constant 0 : i32
    %c0_i32_114 = arith.constant 0 : i32
    %c0_i32_115 = arith.constant 0 : i32
    %206 = tpu.memref_slice %arg4[%c0_i32_114, %c0_i32_115] : memref<64x128xf32, #tpu.memory_space<any>> -> memref<1x128xf32, #tpu.memory_space<any>>
    %c0_i32_116 = arith.constant 0 : i32
    %c0_i32_117 = arith.constant 0 : i32
    %207 = tpu.memref_slice %arg9[%c0_i32_116, %c0_i32_117] : memref<16x128xf32, #tpu.memory_space<vmem>> -> memref<1x128xf32, #tpu.memory_space<vmem>>
    %208 = tpu.memref_slice %arg10[%c0_i32_113] : memref<1x!tpu.dma_semaphore, #tpu.memory_space<semaphore_mem>> -> memref<1x!tpu.dma_semaphore, #tpu.memory_space<semaphore_mem>>
    %209 = tpu.memref_squeeze %208 : memref<1x!tpu.dma_semaphore, #tpu.memory_space<semaphore_mem>> -> memref<!tpu.dma_semaphore, #tpu.memory_space<semaphore_mem>>
    tpu.wait_dma2 semaphore(%209 : memref<!tpu.dma_semaphore, #tpu.memory_space<semaphore_mem>>) src(%206 : memref<1x128xf32, #tpu.memory_space<any>>) dst(%207 : memref<1x128xf32, #tpu.memory_space<vmem>>)
    %c0_i32_118 = arith.constant 0 : i32
    %c0_i32_119 = arith.constant 0 : i32
    %c0_i32_120 = arith.constant 0 : i32
    %210 = tpu.memref_slice %arg4[%c0_i32_119, %c0_i32_120] : memref<64x128xf32, #tpu.memory_space<any>> -> memref<1x128xf32, #tpu.memory_space<any>>
    %c0_i32_121 = arith.constant 0 : i32
    %c0_i32_122 = arith.constant 0 : i32
    %211 = tpu.memref_slice %arg9[%c0_i32_121, %c0_i32_122] : memref<16x128xf32, #tpu.memory_space<vmem>> -> memref<1x128xf32, #tpu.memory_space<vmem>>
    %212 = tpu.memref_slice %arg10[%c0_i32_118] : memref<1x!tpu.dma_semaphore, #tpu.memory_space<semaphore_mem>> -> memref<1x!tpu.dma_semaphore, #tpu.memory_space<semaphore_mem>>
    %213 = tpu.memref_squeeze %212 : memref<1x!tpu.dma_semaphore, #tpu.memory_space<semaphore_mem>> -> memref<!tpu.dma_semaphore, #tpu.memory_space<semaphore_mem>>
    tpu.wait_dma2 semaphore(%213 : memref<!tpu.dma_semaphore, #tpu.memory_space<semaphore_mem>>) src(%210 : memref<1x128xf32, #tpu.memory_space<any>>) dst(%211 : memref<1x128xf32, #tpu.memory_space<vmem>>)
    %c0_i32_123 = arith.constant 0 : i32
    %c0_i32_124 = arith.constant 0 : i32
    %c0_i32_125 = arith.constant 0 : i32
    %214 = tpu.memref_slice %arg4[%c0_i32_124, %c0_i32_125] : memref<64x128xf32, #tpu.memory_space<any>> -> memref<1x128xf32, #tpu.memory_space<any>>
    %c0_i32_126 = arith.constant 0 : i32
    %c0_i32_127 = arith.constant 0 : i32
    %215 = tpu.memref_slice %arg9[%c0_i32_126, %c0_i32_127] : memref<16x128xf32, #tpu.memory_space<vmem>> -> memref<1x128xf32, #tpu.memory_space<vmem>>
    %216 = tpu.memref_slice %arg10[%c0_i32_123] : memref<1x!tpu.dma_semaphore, #tpu.memory_space<semaphore_mem>> -> memref<1x!tpu.dma_semaphore, #tpu.memory_space<semaphore_mem>>
    %217 = tpu.memref_squeeze %216 : memref<1x!tpu.dma_semaphore, #tpu.memory_space<semaphore_mem>> -> memref<!tpu.dma_semaphore, #tpu.memory_space<semaphore_mem>>
    tpu.wait_dma2 semaphore(%217 : memref<!tpu.dma_semaphore, #tpu.memory_space<semaphore_mem>>) src(%214 : memref<1x128xf32, #tpu.memory_space<any>>) dst(%215 : memref<1x128xf32, #tpu.memory_space<vmem>>)
    %c0_i32_128 = arith.constant 0 : i32
    %c0_i32_129 = arith.constant 0 : i32
    %c0_i32_130 = arith.constant 0 : i32
    %218 = tpu.memref_slice %arg4[%c0_i32_129, %c0_i32_130] : memref<64x128xf32, #tpu.memory_space<any>> -> memref<1x128xf32, #tpu.memory_space<any>>
    %c0_i32_131 = arith.constant 0 : i32
    %c0_i32_132 = arith.constant 0 : i32
    %219 = tpu.memref_slice %arg9[%c0_i32_131, %c0_i32_132] : memref<16x128xf32, #tpu.memory_space<vmem>> -> memref<1x128xf32, #tpu.memory_space<vmem>>
    %220 = tpu.memref_slice %arg10[%c0_i32_128] : memref<1x!tpu.dma_semaphore, #tpu.memory_space<semaphore_mem>> -> memref<1x!tpu.dma_semaphore, #tpu.memory_space<semaphore_mem>>
    %221 = tpu.memref_squeeze %220 : memref<1x!tpu.dma_semaphore, #tpu.memory_space<semaphore_mem>> -> memref<!tpu.dma_semaphore, #tpu.memory_space<semaphore_mem>>
    tpu.wait_dma2 semaphore(%221 : memref<!tpu.dma_semaphore, #tpu.memory_space<semaphore_mem>>) src(%218 : memref<1x128xf32, #tpu.memory_space<any>>) dst(%219 : memref<1x128xf32, #tpu.memory_space<vmem>>)
    %c0_i32_133 = arith.constant 0 : i32
    %c0_i32_134 = arith.constant 0 : i32
    %c0_i32_135 = arith.constant 0 : i32
    %222 = tpu.memref_slice %arg4[%c0_i32_134, %c0_i32_135] : memref<64x128xf32, #tpu.memory_space<any>> -> memref<1x128xf32, #tpu.memory_space<any>>
    %c0_i32_136 = arith.constant 0 : i32
    %c0_i32_137 = arith.constant 0 : i32
    %223 = tpu.memref_slice %arg9[%c0_i32_136, %c0_i32_137] : memref<16x128xf32, #tpu.memory_space<vmem>> -> memref<1x128xf32, #tpu.memory_space<vmem>>
    %224 = tpu.memref_slice %arg10[%c0_i32_133] : memref<1x!tpu.dma_semaphore, #tpu.memory_space<semaphore_mem>> -> memref<1x!tpu.dma_semaphore, #tpu.memory_space<semaphore_mem>>
    %225 = tpu.memref_squeeze %224 : memref<1x!tpu.dma_semaphore, #tpu.memory_space<semaphore_mem>> -> memref<!tpu.dma_semaphore, #tpu.memory_space<semaphore_mem>>
    tpu.wait_dma2 semaphore(%225 : memref<!tpu.dma_semaphore, #tpu.memory_space<semaphore_mem>>) src(%222 : memref<1x128xf32, #tpu.memory_space<any>>) dst(%223 : memref<1x128xf32, #tpu.memory_space<vmem>>)
    %c0_i32_138 = arith.constant 0 : i32
    %c0_i32_139 = arith.constant 0 : i32
    %c0_i32_140 = arith.constant 0 : i32
    %226 = tpu.memref_slice %arg4[%c0_i32_139, %c0_i32_140] : memref<64x128xf32, #tpu.memory_space<any>> -> memref<1x128xf32, #tpu.memory_space<any>>
    %c0_i32_141 = arith.constant 0 : i32
    %c0_i32_142 = arith.constant 0 : i32
    %227 = tpu.memref_slice %arg9[%c0_i32_141, %c0_i32_142] : memref<16x128xf32, #tpu.memory_space<vmem>> -> memref<1x128xf32, #tpu.memory_space<vmem>>
    %228 = tpu.memref_slice %arg10[%c0_i32_138] : memref<1x!tpu.dma_semaphore, #tpu.memory_space<semaphore_mem>> -> memref<1x!tpu.dma_semaphore, #tpu.memory_space<semaphore_mem>>
    %229 = tpu.memref_squeeze %228 : memref<1x!tpu.dma_semaphore, #tpu.memory_space<semaphore_mem>> -> memref<!tpu.dma_semaphore, #tpu.memory_space<semaphore_mem>>
    tpu.wait_dma2 semaphore(%229 : memref<!tpu.dma_semaphore, #tpu.memory_space<semaphore_mem>>) src(%226 : memref<1x128xf32, #tpu.memory_space<any>>) dst(%227 : memref<1x128xf32, #tpu.memory_space<vmem>>)
    %c0_i32_143 = arith.constant 0 : i32
    %c0_i32_144 = arith.constant 0 : i32
    %c0_i32_145 = arith.constant 0 : i32
    %230 = tpu.memref_slice %arg4[%c0_i32_144, %c0_i32_145] : memref<64x128xf32, #tpu.memory_space<any>> -> memref<1x128xf32, #tpu.memory_space<any>>
    %c0_i32_146 = arith.constant 0 : i32
    %c0_i32_147 = arith.constant 0 : i32
    %231 = tpu.memref_slice %arg9[%c0_i32_146, %c0_i32_147] : memref<16x128xf32, #tpu.memory_space<vmem>> -> memref<1x128xf32, #tpu.memory_space<vmem>>
    %232 = tpu.memref_slice %arg10[%c0_i32_143] : memref<1x!tpu.dma_semaphore, #tpu.memory_space<semaphore_mem>> -> memref<1x!tpu.dma_semaphore, #tpu.memory_space<semaphore_mem>>
    %233 = tpu.memref_squeeze %232 : memref<1x!tpu.dma_semaphore, #tpu.memory_space<semaphore_mem>> -> memref<!tpu.dma_semaphore, #tpu.memory_space<semaphore_mem>>
    tpu.wait_dma2 semaphore(%233 : memref<!tpu.dma_semaphore, #tpu.memory_space<semaphore_mem>>) src(%230 : memref<1x128xf32, #tpu.memory_space<any>>) dst(%231 : memref<1x128xf32, #tpu.memory_space<vmem>>)
    %c0_i32_148 = arith.constant 0 : i32
    %c0_i32_149 = arith.constant 0 : i32
    %c0_i32_150 = arith.constant 0 : i32
    %234 = tpu.memref_slice %arg4[%c0_i32_149, %c0_i32_150] : memref<64x128xf32, #tpu.memory_space<any>> -> memref<1x128xf32, #tpu.memory_space<any>>
    %c0_i32_151 = arith.constant 0 : i32
    %c0_i32_152 = arith.constant 0 : i32
    %235 = tpu.memref_slice %arg9[%c0_i32_151, %c0_i32_152] : memref<16x128xf32, #tpu.memory_space<vmem>> -> memref<1x128xf32, #tpu.memory_space<vmem>>
    %236 = tpu.memref_slice %arg10[%c0_i32_148] : memref<1x!tpu.dma_semaphore, #tpu.memory_space<semaphore_mem>> -> memref<1x!tpu.dma_semaphore, #tpu.memory_space<semaphore_mem>>
    %237 = tpu.memref_squeeze %236 : memref<1x!tpu.dma_semaphore, #tpu.memory_space<semaphore_mem>> -> memref<!tpu.dma_semaphore, #tpu.memory_space<semaphore_mem>>
    tpu.wait_dma2 semaphore(%237 : memref<!tpu.dma_semaphore, #tpu.memory_space<semaphore_mem>>) src(%234 : memref<1x128xf32, #tpu.memory_space<any>>) dst(%235 : memref<1x128xf32, #tpu.memory_space<vmem>>)
    %c0_i32_153 = arith.constant 0 : i32
    %c0_i32_154 = arith.constant 0 : i32
    %c0_i32_155 = arith.constant 0 : i32
    %238 = tpu.memref_slice %arg4[%c0_i32_154, %c0_i32_155] : memref<64x128xf32, #tpu.memory_space<any>> -> memref<1x128xf32, #tpu.memory_space<any>>
    %c0_i32_156 = arith.constant 0 : i32
    %c0_i32_157 = arith.constant 0 : i32
    %239 = tpu.memref_slice %arg9[%c0_i32_156, %c0_i32_157] : memref<16x128xf32, #tpu.memory_space<vmem>> -> memref<1x128xf32, #tpu.memory_space<vmem>>
    %240 = tpu.memref_slice %arg10[%c0_i32_153] : memref<1x!tpu.dma_semaphore, #tpu.memory_space<semaphore_mem>> -> memref<1x!tpu.dma_semaphore, #tpu.memory_space<semaphore_mem>>
    %241 = tpu.memref_squeeze %240 : memref<1x!tpu.dma_semaphore, #tpu.memory_space<semaphore_mem>> -> memref<!tpu.dma_semaphore, #tpu.memory_space<semaphore_mem>>
    tpu.wait_dma2 semaphore(%241 : memref<!tpu.dma_semaphore, #tpu.memory_space<semaphore_mem>>) src(%238 : memref<1x128xf32, #tpu.memory_space<any>>) dst(%239 : memref<1x128xf32, #tpu.memory_space<vmem>>)
    %c0_158 = arith.constant 0 : index
    %c0_159 = arith.constant 0 : index
    %242 = vector.load %arg9[%c0_158, %c0_159] : memref<16x128xf32, #tpu.memory_space<vmem>>, vector<16x128xf32>
    %c0_160 = arith.constant 0 : index
    %c0_161 = arith.constant 0 : index
    %243 = vector.load %arg5[%c0_160, %c0_161] : memref<128x128xf32, #tpu.memory_space<vmem>>, vector<128x128xf32>
    %cst_162 = arith.constant dense<0.000000e+00> : vector<16x128xf32>
    %244 = tpu.matmul %242, %243, %cst_162 {dimension_numbers = #tpu.dot_dimension_numbers<[1], [0], [0], [1], [0, 0, 1, 1], [], []>, precision = #tpu.contract_precision<fp32>} : vector<16x128xf32>, vector<128x128xf32>, vector<16x128xf32> -> vector<16x128xf32>
    %245 = vector.broadcast %177 : vector<16x1xf32> to vector<16x128xf32>
    %246 = arith.mulf %244, %245 : vector<16x128xf32>
    %c0_163 = arith.constant 0 : index
    %c0_164 = arith.constant 0 : index
    %247 = vector.load %arg6[%c0_163, %c0_164] : memref<1x128xf32, #tpu.memory_space<vmem>>, vector<1x128xf32>
    %248 = vector.broadcast %247 : vector<1x128xf32> to vector<16x128xf32>
    %249 = arith.addf %246, %248 : vector<16x128xf32>
    %c0_165 = arith.constant 0 : index
    %c0_166 = arith.constant 0 : index
    %c0_167 = arith.constant 0 : index
    %250 = vector.load %arg8[%c0_165, %c0_166, %c0_167] : memref<1x16x128xf32, #tpu.memory_space<vmem>>, vector<1x16x128xf32>
    %251 = vector.shape_cast %250 : vector<1x16x128xf32> to vector<16x128xf32>
    %252 = vector.shape_cast %249 : vector<16x128xf32> to vector<1x16x128xf32>
    tpu.vector_store %arg8[%c0_165, %c0_166, %c0_167], %252 {strides = array<i32>} : memref<1x16x128xf32, #tpu.memory_space<vmem>>, vector<1x16x128xf32>,
    return
  }
  func.func @transform_0(%arg0: i32, %arg1: i32, %arg2: memref<2x16xi32, #tpu.memory_space<smem>>) -> (i32, i32, i32) {
    %c0_i32 = arith.constant 0 : i32
    %c0_i32_0 = arith.constant 0 : i32
    %c0_i32_1 = arith.constant 0 : i32
    return %arg0, %c0_i32, %c0_i32_0 : i32, i32, i32
  }
  func.func @transform_2(%arg0: i32, %arg1: i32, %arg2: memref<2x16xi32, #tpu.memory_space<smem>>) -> (i32, i32) {
    %c0_i32 = arith.constant 0 : i32
    %c0_i32_0 = arith.constant 0 : i32
    %c0_i32_1 = arith.constant 0 : i32
    return %c0_i32, %c0_i32_0 : i32, i32
  }
  func.func @transform_3(%arg0: i32, %arg1: i32, %arg2: memref<2x16xi32, #tpu.memory_space<smem>>) -> (i32, i32) {
    %c0_i32 = arith.constant 0 : i32
    %c0_i32_0 = arith.constant 0 : i32
    %c0_i32_1 = arith.constant 0 : i32
    return %c0_i32, %c0_i32_0 : i32, i32
  }
  func.func @transform_4(%arg0: i32, %arg1: i32, %arg2: memref<2x16xi32, #tpu.memory_space<smem>>) -> (i32, i32, i32) {
    %c0_i32 = arith.constant 0 : i32
    %c0_i32_0 = arith.constant 0 : i32
    %c0_i32_1 = arith.constant 0 : i32
    return %arg0, %c0_i32, %c0_i32_0 : i32, i32, i32
  }
  func.func @transform_5(%arg0: i32, %arg1: i32, %arg2: memref<2x16xi32, #tpu.memory_space<smem>>) -> (i32, i32, i32) {
    %c0_i32 = arith.constant 0 : i32
    %c0_i32_0 = arith.constant 0 : i32
    return %arg0, %arg1, %c0_i32 : i32, i32, i32
  }
}

</mosaic_0001>

<bundles_post_ra>
// kernel: custom_model2_forward.1
= control target key start
LH: loop header
LB: loop body
LE: loop exit
PB: predicated region body
PF: predicated region fallthrough
CT: control target
= control target key end

     0   :  { %s1914_s24 = smov [#allocation5]   ;;  %s2421_s0 = inlined_call_operand.vmem [shape: s32[2,16], index: 0, kind: input, shape index: {}, may-alias: {0,1}]   ;;  %s2422_s1 = inlined_call_operand.vmem [shape: s32[2,1,16], index: 1, kind: input, shape index: {}, may-alias: {0,1}]   ;;  %s2423_s2 = inlined_call_operand.vmem [shape: f32[64,128], index: 2, kind: input, shape index: {}]   ;;  %s2424_s3 = inlined_call_operand.vmem [shape: f32[128,128], index: 3, kind: input, shape index: {}]   ;;  %s2425_s4 = inlined_call_operand.vmem [shape: f32[1,128], index: 4, kind: input, shape index: {}]   ;;  %s2426_s5 = inlined_call_operand.hbm [shape: s32[2,1,16], index: 5, kind: output, shape index: {0}]   ;;  %s2427_s6 = inlined_call_operand.vmem [shape: f32[2,16,128], index: 6, kind: output, shape index: {1}]  }
   0x1   :  { %s13_s23 = sshll.u32 %s2421_s0, 4  ;;  %s14_s23 = int_to_ptr.vmem [resolvable:$true] %s13_s23 }
   0x2   :  { %16 = dma.vmem_to_smem %s14_s23, 32, %s1914_s24, [#allocation4] }
   0x3   :  { %1882 = dma.done.wait [#allocation4], 32 }
   0x4   :  { %1883 = vsyncadd [#allocation4], 4294967264 }
   0x5   :  { %19 = sfence }
   0x6   :  { %20 = vsyncpa [#allocation7], 0 }
   0x7   :  { %22 = vsyncpa [#allocation7 + $0x1], 0  ;;  %s1955_s25 = smov 0   ;;  %s1957_s26 = smov 0  }
   0x8   :  { %s1959_s27 = smov 0   ;;  %s1961_s28 = smov 0  }
   0x9   :  { %s1963_s29 = smov 0   ;;  %s1965_s30 = smov 0  }
   0xa LB: > { %2431 = sst [smem:[#allocation27_spill]] %s1908_s29  ;;  %s1698_s0 = sadd.s32 4294967295, %s1912_s30   ;;  %s1912_s30 = sphi %s1965_s30, %s28_s30   ;;  %s1908_s29 = sphi %s1963_s29, %s2438_s29   ;;  %s1904_s28 = sphi %s1961_s28, %s2437_s28   ;;  %s1900_s27 = sphi %s1959_s27, %s2441_s27   ;;  %s1896_s26 = sphi %s1957_s26, %s2440_s26   ;;  %s1892_s25 = sphi %s1955_s25, %s2439_s25  }
   0xb   : > { %s1699_s7 = sadd.s32 4294967294, %s1912_s30   ;;  %s40_s8 = sadd.s32 1, %s1908_s29 }
   0xc   : > { %s115_s9 = sadd.s32 1, %s1900_s27  ;;  %p42_p0 = scmp.ge.s32.totalorder %s40_s8, 2 }
   0xd   : > { %p125_p1 = scmp.ne.s32.totalorder %s1900_s27, %s1896_s26  ;;  %p126_p2 = scmp.eq.s32.totalorder %s1698_s0, 1 }
   0xe   : > { %p131_p3 = scmp.ne.s32.totalorder %s1896_s26, %s1892_s25  ;;  %s2443_s8 = smov (%p42_p0, %s40_s8), 0 }
   0xf   : > { %2432 = sst [smem:[#allocation28_spill]] %s2443_s8  ;;  %p1995_p4 = por %p126_p2, %p125_p1 }
  0x10   : > { %p132_p5 = scmp.eq.s32.totalorder %s1699_s7, 1  ;;  %s112_s11 = ssub.s32 %s1908_s29, %s2443_s8 }
  0x11   : > { %p1702_p6 = scmp.ge.s32.totalorder %s1912_s30, 1  ;;  %p113_p7 = scmp.eq.s32.totalorder %s112_s11, 0 }
  0x12   : > { %p2002_p8 = por %p132_p5, %p131_p3  ;;  %p190_p9 = scmp.lt.s32.totalorder %s1912_s30, 3 }
  0x13   : > { %s2008_s13 = scalar_select %p113_p7, %s1900_s27, %s115_s9  }
  0x14   : > { %p191_p10 = pnand %p1702_p6, %p190_p9 }
  0x15   : > { %s2430_s14 = sand.u32 (!%p191_p10), 1, %s1896_s26   ;;  %p222_p11 = scmp.lt.s32.totalorder (!%p191_p10), %s1904_s28, 1 }
  0x16   : > { %194 = sbr.rel (%p191_p10) target bundleno = 659 (0x293), region = 32  ;;  %s2013_s15 = sshll.u32 (!%p191_p10), %s1904_s28, 7 }
  0x17   : > { %s243_s17 = sld [smem:[#allocation5 + %s2013_s15]] (!%p191_p10)  ;;  %s2034_s11 = scalar_lea.vmem (!%p191_p10), [#allocation6], %s2430_s14 }
  0x1b   : > { %s2016_s16 = scalar_select %p222_p11, %s1904_s28, 1 }
  0x1d   : > { %s1726_s21 = sshll.u32 %s2016_s16, 4  ;;  %s244_s9 = scalar_lea.vmem %s2423_s2, %s243_s17 }
  0x1e   : > { %s2027_s24 = scalar_lea.vmem %s2427_s6, %s1726_s21  ;;  %v259_v0 = vld [vmem:[%s244_s9] sm:$0x1] }
  0x1f   : > { %260 = vst [vmem:[#allocation2] sm:$0x1] %v259_v0 }
  0x20   : > { %278 = vsyncadd [#allocation3], 16  ;;  %s286_s8 = sadd.s32 1, %s2013_s15 }
  0x21   : > { %s287_s18 = sld [smem:[#allocation5 + %s286_s8]] }
  0x27   : > { %s288_s29 = scalar_lea.vmem %s2423_s2, %s287_s18 }
  0x28   : > { %v304_v1 = vld [vmem:[%s288_s29] sm:$0x1] }
  0x29   : > { %305 = vst [vmem:[#allocation2 + $0x1] sm:$0x1] %v304_v1 }
  0x2a   : > { %323 = vsyncadd [#allocation3], 16  ;;  %s331_s21 = sadd.s32 2, %s2013_s15 }
  0x2b   : > { %s332_s22 = sld [smem:[#allocation5 + %s331_s21]] }
  0x31   : > { %s333_s0 = scalar_lea.vmem %s2423_s2, %s332_s22 }
  0x32   : > { %v349_v2 = vld [vmem:[%s333_s0] sm:$0x1] }
  0x33   : > { %350 = vst [vmem:[#allocation2 + $0x2] sm:$0x1] %v349_v2 }
  0x34   : > { %368 = vsyncadd [#allocation3], 16  ;;  %s376_s7 = sadd.s32 3, %s2013_s15 }
  0x35   : > { %s377_s8 = sld [smem:[#allocation5 + %s376_s7]] }
  0x3b   : > { %s378_s20 = scalar_lea.vmem %s2423_s2, %s377_s8 }
  0x3c   : > { %v394_v3 = vld [vmem:[%s378_s20] sm:$0x1] }
  0x3d   : > { %395 = vst [vmem:[#allocation2 + $0x3] sm:$0x1] %v394_v3 }
  0x3e   : > { %413 = vsyncadd [#allocation3], 16  ;;  %s421_s29 = sadd.s32 4, %s2013_s15 }
  0x3f   : > { %s422_s18 = sld [smem:[#allocation5 + %s421_s29]] }
  0x45   : > { %s423_s22 = scalar_lea.vmem %s2423_s2, %s422_s18 }
  0x46   : > { %v439_v4 = vld [vmem:[%s423_s22] sm:$0x1] }
  0x47   : > { %440 = vst [vmem:[#allocation2 + $0x4] sm:$0x1] %v439_v4 }
  0x48   : > { %458 = vsyncadd [#allocation3], 16  ;;  %s466_s17 = sadd.s32 5, %s2013_s15 }
  0x49   : > { %s467_s23 = sld [smem:[#allocation5 + %s466_s17]] }
  0x4f   : > { %s468_s14 = scalar_lea.vmem %s2423_s2, %s467_s23 }
  0x50   : > { %v484_v5 = vld [vmem:[%s468_s14] sm:$0x1] }
  0x51   : > { %485 = vst [vmem:[#allocation2 + $0x5] sm:$0x1] %v484_v5 }
  0x52   : > { %503 = vsyncadd [#allocation3], 16  ;;  %s511_s8 = sadd.s32 6, %s2013_s15 }
  0x53   : > { %s512_s9 = sld [smem:[#allocation5 + %s511_s8]] }
  0x59   : > { %s513_s18 = scalar_lea.vmem %s2423_s2, %s512_s9 }
  0x5a   : > { %v529_v6 = vld [vmem:[%s513_s18] sm:$0x1] }
  0x5b   : > { %530 = vst [vmem:[#allocation2 + $0x6] sm:$0x1] %v529_v6 }
  0x5c   : > { %548 = vsyncadd [#allocation3], 16  ;;  %s556_s19 = sadd.s32 7, %s2013_s15 }
  0x5d   : > { %s557_s21 = sld [smem:[#allocation5 + %s556_s19]] }
  0x63   : > { %s558_s23 = scalar_lea.vmem %s2423_s2, %s557_s21 }
  0x64   : > { %v574_v7 = vld [vmem:[%s558_s23] sm:$0x1] }
  0x65   : > { %575 = vst [vmem:[#allocation2 + $0x7] sm:$0x1] %v574_v7 }
  0x66   : > { %593 = vsyncadd [#allocation3], 16  ;;  %s601_s0 = sadd.s32 8, %s2013_s15 }
  0x67   : > { %s602_s7 = sld [smem:[#allocation5 + %s601_s0]] }
  0x6d   : > { %s603_s9 = scalar_lea.vmem %s2423_s2, %s602_s7 }
  0x6e   : > { %v619_v8 = vld [vmem:[%s603_s9] sm:$0x1] }
  0x6f   : > { %620 = vst [vmem:[#allocation2 + $0x8] sm:$0x1] %v619_v8 }
  0x70   : > { %638 = vsyncadd [#allocation3], 16  ;;  %s646_s20 = sadd.s32 9, %s2013_s15 }
  0x71   : > { %s647_s29 = sld [smem:[#allocation5 + %s646_s20]] }
  0x77   : > { %s648_s21 = scalar_lea.vmem %s2423_s2, %s647_s29 }
  0x78   : > { %v664_v9 = vld [vmem:[%s648_s21] sm:$0x1] }
  0x79   : > { %665 = vst [vmem:[#allocation2 + $0x9] sm:$0x1] %v664_v9 }
  0x7a   : > { %683 = vsyncadd [#allocation3], 16  ;;  %s691_s22 = sadd.s32 10, %s2013_s15 }
  0x7b   : > { %s692_s17 = sld [smem:[#allocation5 + %s691_s22]] }
  0x81   : > { %s693_s7 = scalar_lea.vmem %s2423_s2, %s692_s17 }
  0x82   : > { %v709_v10 = vld [vmem:[%s693_s7] sm:$0x1] }
  0x83   : > { %710 = vst [vmem:[#allocation2 + $0xa] sm:$0x1] %v709_v10 }
  0x84   : > { %728 = vsyncadd [#allocation3], 16  ;;  %s736_s14 = sadd.s32 11, %s2013_s15 }
  0x85   : > { %s737_s8 = sld [smem:[#allocation5 + %s736_s14]] }
  0x8b   : > { %s738_s29 = scalar_lea.vmem %s2423_s2, %s737_s8 }
  0x8c   : > { %v754_v11 = vld [vmem:[%s738_s29] sm:$0x1] }
  0x8d   : > { %755 = vst [vmem:[#allocation2 + $0xb] sm:$0x1] %v754_v11 }
  0x8e   : > { %773 = vsyncadd [#allocation3], 16  ;;  %s781_s18 = sadd.s32 12, %s2013_s15 }
  0x8f   : > { %s782_s19 = sld [smem:[#allocation5 + %s781_s18]] }
  0x95   : > { %s783_s17 = scalar_lea.vmem %s2423_s2, %s782_s19 }
  0x96   : > { %v799_v12 = vld [vmem:[%s783_s17] sm:$0x1] }
  0x97   : > { %800 = vst [vmem:[#allocation2 + $0xc] sm:$0x1] %v799_v12 }
  0x98   : > { %818 = vsyncadd [#allocation3], 16  ;;  %s826_s23 = sadd.s32 13, %s2013_s15 }
  0x99   : > { %s827_s0 = sld [smem:[#allocation5 + %s826_s23]] }
  0x9f   : > { %s828_s8 = scalar_lea.vmem %s2423_s2, %s827_s0 }
  0xa0   : > { %v844_v13 = vld [vmem:[%s828_s8] sm:$0x1] }
  0xa1   : > { %845 = vst [vmem:[#allocation2 + $0xd] sm:$0x1] %v844_v13 }
  0xa2   : > { %863 = vsyncadd [#allocation3], 16  ;;  %s871_s9 = sadd.s32 14, %s2013_s15 }
  0xa3   : > { %s872_s20 = sld [smem:[#allocation5 + %s871_s9]] }
  0xa9   : > { %s873_s19 = scalar_lea.vmem %s2423_s2, %s872_s20 }
  0xaa   : > { %v889_v14 = vld [vmem:[%s873_s19] sm:$0x1] }
  0xab   : > { %890 = vst [vmem:[#allocation2 + $0xe] sm:$0x1] %v889_v14 }
  0xac   : > { %908 = vsyncadd [#allocation3], 16  ;;  %s916_s21 = sadd.s32 15, %s2013_s15  ;;  %s2435_s8 = scalar_lea.vmem %s2422_s1, %s2016_s16  ;;  %vm960_vm0 = vcmask 122880   ;;  %v955_v17 = vlaneseq }
  0xad   : > { %s917_s22 = sld [smem:[#allocation5 + %s916_s21]]  ;;  %v954_v16 = vld [vmem:[%s2435_s8] sm:$0x1] }
  0xb3   : > { %s918_s0 = scalar_lea.vmem %s2423_s2, %s917_s22 }
  0xb4   : > { %v934_v15 = vld [vmem:[%s918_s0] sm:$0x1] }
  0xb5   : > { %935 = vst [vmem:[#allocation2 + $0xf] sm:$0x1] %v934_v15 }
  0xb6   : > { %953 = vsyncadd [#allocation3], 16  ;;  %vm957_vm1 = vcmp.eq.s32.totalorder %v954_v16, 1  ;;  %vm958_vm2 = vcmp.eq.s32.totalorder %v954_v16, 2  ;;  %v1915_v18 = vmov 0   ;;  %v2103_v20 = vand.u32 127, %v955_v17 }
  0xb7   : > { %v992_v19 = vsel %vm957_vm1, 1, %v1915_v18  ;;  %v1008_v21 = vsel %vm958_vm2, 1, %v1915_v18  ;;  %v1035_v2 = vshrl.u32 %v955_v17, 7  ;;  %v1916_v16 = vmov 0.0  }
  0xb8   : > { %v993_v22 = vsel %vm960_vm0, %v992_v19, 2147483648  ;;  %v959_v24 = vsel %vm957_vm1, %v2103_v20, 16  ;;  %v976_v25 = vsel %vm958_vm2, %v2103_v20, 16  ;;  %v1009_v27 = vsel %vm960_vm0, %v1008_v21, 2147483648 }
  0xb9   : > { %v995_v23 = vshra.s32 %v993_v22, 16  ;;  %v961_v26 = vsel %vm960_vm0, %v959_v24, 2147483647  ;;  %v977_v30 = vsel %vm960_vm0, %v976_v25, 2147483647  ;;  %v1011_v32 = vshra.s32 %v1009_v27, 16 }
  0xba   : > { %v963_v29 = vshra.s32 %v961_v26, 16  ;;  %v979_v33 = vshra.s32 %v977_v30, 16  ;;  %v994_v36 = vand.u32 65535, %v993_v22  ;;  %v962_v37 = vand.u32 65535, %v961_v26 }
  0xbb   : > { %v997_v28 = vcvt.s32.f32 %v995_v23  ;;  %v1013_v34 = vcvt.s32.f32 %v1011_v32  ;;  %v1010_v43 = vand.u32 65535, %v1009_v27  ;;  %v978_v45 = vand.u32 65535, %v977_v30 }
  0xbc   : > { %v965_v31 = vcvt.s32.f32 %v963_v29  ;;  %v981_v35 = vcvt.s32.f32 %v979_v33  ;;  %v996_v38 = vcvt.s32.f32 %v994_v36  ;;  %v964_v40 = vcvt.s32.f32 %v962_v37 }
  0xbd   : > { %998 = vmax.xlane.f32.xlu0 %v997_v28  ;;  %v1012_v46 = vcvt.s32.f32 %v1010_v43  ;;  %v980_v48 = vcvt.s32.f32 %v978_v45  ;;  %v1036_v11 = vadd.s32 8, %v1035_v2 }
  0xbe   : > { %966 = vmin.xlane.f32.xlu1 %v965_v31 }
  0xc5   : > { %1014 = vmax.xlane.f32.xlu0 %v1013_v34 }
  0xc6   : > { %982 = vmin.xlane.f32.xlu1 %v981_v35 }
 0x130   : > { %v999_v39 = vpop.xlane.xlu0 %998 }
 0x131   : > { %vm1000_vm3 = vcmp.eq.f32.partialorder %v997_v28, %v999_v39  ;;  %v967_v41 = vpop.xlane.xlu1 %966  ;;  %v1005_v55 = vcvt.f32.s32 %v999_v39 }
 0x132   : > { %v1001_v42 = vsel %vm1000_vm3, %v996_v38, -inf  ;;  %vm968_vm4 = vcmp.eq.f32.partialorder %v965_v31, %v967_v41  ;;  %v973_v54 = vcvt.f32.s32 %v967_v41 }
 0x133   : > { %1002 = vmax.xlane.f32.xlu2 %v1001_v42  ;;  %v969_v44 = vsel %vm968_vm4, %v964_v40, inf  ;;  %v1006_v62 = vshll.u32 %v1005_v55, 16 }
 0x134   : > { %970 = vmin.xlane.f32.xlu0 %v969_v44  ;;  %v974_v58 = vshll.u32 %v973_v54, 16 }
 0x138   : > { %v1015_v47 = vpop.xlane.xlu0 %1014 }
 0x139   : > { %vm1016_vm5 = vcmp.eq.f32.partialorder %v1013_v34, %v1015_v47  ;;  %v983_v49 = vpop.xlane.xlu1 %982  ;;  %v1021_v56 = vcvt.f32.s32 %v1015_v47 }
 0x13a   : > { %v1017_v50 = vsel %vm1016_vm5, %v1012_v46, -inf  ;;  %vm984_vm6 = vcmp.eq.f32.partialorder %v981_v35, %v983_v49  ;;  %v989_v59 = vcvt.f32.s32 %v983_v49 }
 0x13b   : > { %1018 = vmax.xlane.f32.xlu2 %v1017_v50  ;;  %v985_v51 = vsel %vm984_vm6, %v980_v48, inf  ;;  %v1022_v63 = vshll.u32 %v1021_v56, 16 }
 0x13c   : > { %986 = vmin.xlane.f32.xlu1 %v985_v51  ;;  %v990_v4 = vshll.u32 %v989_v59, 16 }
 0x1a6   : > { %v1003_v52 = vpop.xlane.xlu2 %1002 }
 0x1a7   : > { %v971_v53 = vpop.xlane.xlu0 %970  ;;  %v1004_v60 = vcvt.f32.s32 %v1003_v52 }
 0x1a8   : > { %v972_v57 = vcvt.f32.s32 %v971_v53 }
 0x1a9   : > { %v1007_v5 = vadd.s32 %v1006_v62, %v1004_v60 }
 0x1aa   : > { %v975_v0 = vadd.s32 %v974_v58, %v972_v57 }
 0x1ac   : > { %v1040_v8 = vperm.slane %v975_v0, 0  ;;  %vm1025_vm7 = vcmp.ge.s32.totalorder %v2103_v20, %v975_v0 }
 0x1ae   : > { %v1019_v61 = vpop.xlane.xlu2 %1018  ;;  %vm1041_vm11 = vcmp.ge.s32.totalorder %v1035_v2, %v1040_v8  ;;  %vm1042_vm15 = vcmp.ge.s32.totalorder %v1036_v11, %v1040_v8 }
 0x1af   : > { %v1020_v1 = vcvt.f32.s32 %v1019_v61  ;;  %v987_v3 = vpop.xlane.xlu1 %986 }
 0x1b0   : > { %v988_v7 = vcvt.f32.s32 %v987_v3 }
 0x1b1   : > { %v1023_v6 = vadd.s32 %v1022_v63, %v1020_v1 }
 0x1b2   : > { %v991_v10 = vadd.s32 %v990_v4, %v988_v7 }
 0x1b3   : > { %v1024_v9 = vmul.u32 %v1023_v6, %v1007_v5 }
 0x1b4   : > { %vm1026_vm9 = vcmp.le.s32.totalorder %v2103_v20, %v991_v10  ;;  %v1043_v12 = vperm.slane %v991_v10, 0 }
 0x1b5   : > { %vm1028_vm8 = vcmp.gt.s32.totalorder %v1024_v9, 0  ;;  %vm1027_vm10 = vmand %vm1025_vm7, %vm1026_vm9 }
 0x1b6   : > { %v1029_v13 = vsel %vm1028_vm8, 1, %v1915_v18  ;;  %vm1031_vm12 = vmand %vm1027_vm10, %vm1028_vm8  ;;  %vm1044_vm13 = vcmp.le.s32.totalorder %v1035_v2, %v1043_v12  ;;  %vm1045_vm14 = vcmp.le.s32.totalorder %v1036_v11, %v1043_v12 }
 0x1b7   : > { %v1048_v14 = vperm.slane %v1029_v13, 0  ;;  %v1032_v15 = vsel %vm1031_vm12, 1, %v1915_v18  ;;  %vm1046_vm1 = vmand %vm1041_vm11, %vm1044_vm13 }
 0x1b8   : > { %1033 = vst.msk [vmem:[%s2034_s11] sm:$0x1] %vm960_vm0, %v1032_v15  ;;  %vm1047_vm3 = vmand %vm1042_vm15, %vm1045_vm14 }
 0x1b9   : > { %vm1049_vm2 = vcmp.eq.s32.totalorder %v1048_v14, 1 }
 0x1ba   : > { %vm1050_vm4 = vmand %vm1046_vm1, %vm1049_vm2 }
 0x1bb   : > { %vm1051_vm5 = vmand %vm1047_vm3, %vm1049_vm2  ;;  %v2119_v17 = vsel %vm1050_vm4, 1.0, %v1916_v16 }
 0x1bc   : > { %v2121_v19 = vsel %vm1051_vm5, 1.0, %v1916_v16 }
 0x1bd   : > { %1884 = dma.done.wait [#allocation3], 256 }
 0x1be   : > { %1885 = vsyncadd [#allocation3], 4294967040  ;;  %v1106_v20 = vld [vmem:[%s2424_s3 + $0x78] sm:$0xff]  ;;  %v1105_v18 = vld [vmem:[%s2424_s3 + $0x70] sm:$0xff]  ;;  %s1507_s29 = scalar_lea.hbm %s2426_s5, %s1904_s28  ;;  %s1509_s18 = sshll.u32 %s2034_s11, 4  ;;  %s1510_s18 = int_to_ptr.vmem [resolvable:$true] %s1509_s18 }
 0x1bf   : > { %v1104_v21 = vld [vmem:[%s2424_s3 + $0x68] sm:$0xff]  ;;  %v2132_v22 = vand.u32 4294901760, %v1106_v20  ;;  %v2134_v23 = vand.u32 4294901760, %v1105_v18  ;;  %v1103_v25 = vld [vmem:[%s2424_s3 + $0x60] sm:$0xff]  ;;  %v1102_v26 = vld [vmem:[%s2424_s3 + $0x58] sm:$0xff]  ;;  %s1511_s19 = sshll.u32 %s1507_s29, 4  ;;  %s1512_s19 = int_to_ptr.hbm [resolvable:$true] %s1511_s19 }
 0x1c0   : > { %v2136_v24 = vand.u32 4294901760, %v1104_v21  ;;  %v1101_v27 = vld [vmem:[%s2424_s3 + $0x50] sm:$0xff]  ;;  %v2147_v28 = vand.u32 4294901760, %v1103_v25  ;;  %v2149_v29 = vand.u32 4294901760, %v1102_v26  ;;  %v1100_v31 = vld [vmem:[%s2424_s3 + $0x48] sm:$0xff]  ;;  %v1099_v32 = vld [vmem:[%s2424_s3 + $0x40] sm:$0xff] }
 0x1c1   : > { %v2151_v30 = vand.u32 4294901760, %v1101_v27  ;;  %1108 = vmatpush.msra.mxu0 %v2132_v22  ;;  %v1157_v33 = vsub.f32 %v1106_v20, %v2132_v22  ;;  %v1163_v34 = vsub.f32 %v1105_v18, %v2134_v23  ;;  %1321 = vmatpush.msra.mxu3 %v2132_v22  ;;  %v2164_v36 = vand.u32 4294901760, %v1100_v31  ;;  %v1098_v37 = vld [vmem:[%s2424_s3 + $0x38] sm:$0xff]  ;;  %v1097_v45 = vld [vmem:[%s2424_s3 + $0x30] sm:$0xff]  ;;  %v1096_v55 = vld [vmem:[%s2424_s3 + $0x28] sm:$0xff]  ;;  %s2436_s21 = sand.u32 1, %s1896_s26  }
 0x1c2   : > { %v1169_v35 = vsub.f32 %v1104_v21, %v2136_v24  ;;  %v1175_v38 = vsub.f32 %v1103_v25, %v2147_v28  ;;  %v1181_v39 = vsub.f32 %v1102_v26, %v2149_v29  ;;  %v2171_v40 = vand.u32 4294901760, %v1099_v32  ;;  %v1095_v61 = vld [vmem:[%s2424_s3 + $0x20] sm:$0xff]  ;;  %v1094_v3 = vld [vmem:[%s2424_s3 + $0x18] sm:$0xff]  ;;  %v1093_v9 = vld [vmem:[%s2424_s3 + $0x10] sm:$0xff]  ;;  %s1490_s22 = scalar_lea.sflag [#allocation7], %s2436_s21  ;;  %s1844_s17 = sshra.s32 %s1512_s19, 4  ;;  %s1845_s17 = int_to_ptr.hbm [resolvable:$true] %s1844_s17 }
 0x1c3   : > { %1110 = vmatpush.msra.mxu0 %v2134_v23  ;;  %1263 = vmatpush.msra.mxu2 %v1157_v33  ;;  %v2174_v41 = vand.u32 4294901760, %v1157_v33  ;;  %v2176_v42 = vand.u32 4294901760, %v1163_v34  ;;  %v1187_v44 = vsub.f32 %v1101_v27, %v2151_v30  ;;  %v1193_v47 = vsub.f32 %v1100_v31, %v2164_v36  ;;  %v1092_v15 = vld [vmem:[%s2424_s3 + $0x8] sm:$0xff]  ;;  %v1091_v26 = vld [vmem:[%s2424_s3] sm:$0xff]  ;;  %s1846_s23 = scalar_lea.hbm %s1845_s17, 1  ;;  %s1850_s14 = scalar_lea.hbm %s2426_s5, 2 }
 0x1c4   : > { %v2178_v43 = vand.u32 4294901760, %v1169_v35  ;;  %1323 = vmatpush.msra.mxu3 %v2134_v23  ;;  %v2185_v46 = vand.u32 4294901760, %v1175_v38  ;;  %v2188_v48 = vand.u32 4294901760, %v1098_v37  ;;  %v2194_v52 = vand.u32 4294901760, %v1181_v39  ;;  %p1847_p12 = scmp.ne.s32.totalorder %s1845_s17, %s1846_s23  ;;  %p1851_p1 = scmp.lt.s32.totalorder %s1845_s17, %s2426_s5 }
 0x1c5   : > { %1112 = vmatpush.msra.mxu0 %v2136_v24  ;;  %1266 = vmatpush.msra.mxu2 %v1163_v34  ;;  %v1159_v49 = vsub.f32 %v1157_v33, %v2174_v41  ;;  %v1165_v50 = vsub.f32 %v1163_v34, %v2176_v42  ;;  %v1199_v53 = vsub.f32 %v1099_v32, %v2171_v40  ;;  %v2198_v54 = vand.u32 4294901760, %v1097_v45  ;;  %p1852_p2 = scmp.lt.s32.totalorder %s1850_s14, %s1846_s23 }
 0x1c6   : > { %v1171_v51 = vsub.f32 %v1169_v35, %v2178_v43  ;;  %1325 = vmatpush.msra.mxu3 %v2136_v24  ;;  %v1177_v58 = vsub.f32 %v1175_v38, %v2185_v46  ;;  %v2205_v59 = vand.u32 4294901760, %v1187_v44  ;;  %v2208_v60 = vand.u32 4294901760, %v1193_v47  ;;  %p1848_p13 = pnand %p1847_p12, %p1995_p4 }
 0x1c7   : > { %1114 = vmatpush.msra.mxu0 %v2147_v28  ;;  %1269 = vmatpush.msra.mxu2 %v1169_v35  ;;  %v1160_v56 = vand.u32 4294901760, %v1159_v49  ;;  %v1166_v57 = vand.u32 4294901760, %v1165_v50  ;;  %v1183_v63 = vsub.f32 %v1181_v39, %v2194_v52  ;;  %v1205_v0 = vsub.f32 %v1098_v37, %v2188_v48  ;;  %p1853_p3 = por %p1852_p2, %p1851_p1 }
 0x1c8   : > { %1327 = vmatpush.msra.mxu3 %v2147_v28  ;;  %v1172_v62 = vand.u32 4294901760, %v1171_v51  ;;  %v2216_v1 = vand.u32 4294901760, %v1096_v55  ;;  %v2219_v2 = vand.u32 4294901760, %v1199_v53  ;;  %v1178_v4 = vand.u32 4294901760, %v1177_v58  ;;  %p1849_p0 = pneg %p1848_p13 }
 0x1c9   : > { %1116 = vmatpush.msra.mxu0 %v2149_v29  ;;  %1161 = vmatpush.msra.mxu1 %v1160_v56  ;;  %v1189_v5 = vsub.f32 %v1187_v44, %v2205_v59  ;;  %v1211_v6 = vsub.f32 %v1097_v45, %v2198_v54  ;;  %v2227_v7 = vand.u32 4294901760, %v1095_v61  ;;  %v1195_v8 = vsub.f32 %v1193_v47, %v2208_v60 }
 0x1ca   : > { %1272 = vmatpush.msra.mxu2 %v1175_v38  ;;  %1329 = vmatpush.msra.mxu3 %v2149_v29  ;;  %v1184_v10 = vand.u32 4294901760, %v1183_v63  ;;  %v1217_v11 = vsub.f32 %v1096_v55, %v2216_v1  ;;  %v2236_v12 = vand.u32 4294901760, %v1094_v3  ;;  %v2238_v13 = vand.u32 4294901760, %v1205_v0  ;;  %p1854_p5 = pnand %p1853_p3, %p1849_p0 }
 0x1cb   : > { %1118 = vmatpush.msra.mxu0 %v2151_v30  ;;  %1167 = vmatpush.msra.mxu1 %v1166_v57  ;;  %v1201_v14 = vsub.f32 %v1199_v53, %v2219_v2  ;;  %v1190_v16 = vand.u32 4294901760, %v1189_v5  ;;  %v1223_v20 = vsub.f32 %v1095_v61, %v2227_v7  ;;  %v2247_v18 = vand.u32 4294901760, %v1093_v9  ;;  %v1089_v61 = vld [vmem:[#allocation2] sm:$0xff] }
 0x1cc   : > { %1275 = vmatpush.msra.mxu2 %v1181_v39  ;;  %1331 = vmatpush.msra.mxu3 %v2151_v30  ;;  %v2249_v21 = vand.u32 4294901760, %v1211_v6  ;;  %v1196_v25 = vand.u32 4294901760, %v1195_v8  ;;  %v1207_v27 = vsub.f32 %v1205_v0, %v2238_v13  ;;  %v1229_v31 = vsub.f32 %v1094_v3, %v2236_v12 }
 0x1cd   : > { %1120 = vmatpush.msra.mxu0 %v2164_v36  ;;  %1173 = vmatpush.msra.mxu1 %v1172_v62  ;;  %v2258_v32 = vand.u32 4294901760, %v1092_v15  ;;  %v2260_v33 = vand.u32 4294901760, %v1217_v11  ;;  %v1202_v34 = vand.u32 4294901760, %v1201_v14  ;;  %v1235_v37 = vsub.f32 %v1093_v9, %v2247_v18  ;;  %v1090_v14 = vld [vmem:[#allocation2 + $0x8] sm:$0xff] }
 0x1ce   : > { %1278 = vmatpush.msra.mxu2 %v1187_v44  ;;  %1333 = vmatpush.msra.mxu3 %v2164_v36  ;;  %v1213_v35 = vsub.f32 %v1211_v6, %v2249_v21  ;;  %v2266_v38 = vand.u32 4294901760, %v1091_v26  ;;  %v2268_v39 = vand.u32 4294901760, %v1223_v20  ;;  %v1208_v44 = vand.u32 4294901760, %v1207_v27 }
 0x1cf   : > { %1122 = vmatpush.msra.mxu0 %v2171_v40  ;;  %1179 = vmatpush.msra.mxu1 %v1178_v4  ;;  %v1219_v45 = vsub.f32 %v1217_v11, %v2260_v33  ;;  %v2274_v49 = vand.u32 4294901760, %v1229_v31  ;;  %v2280_v55 = vand.u32 4294901760, %v1235_v37  ;;  %v2293_v3 = vand.u32 4294901760, %v1089_v61 }
 0x1d0   : > { %1281 = vmatpush.msra.mxu2 %v1193_v47  ;;  %1335 = vmatpush.msra.mxu3 %v2171_v40  ;;  %v1241_v47 = vsub.f32 %v1092_v15, %v2258_v32  ;;  %v1214_v50 = vand.u32 4294901760, %v1213_v35  ;;  %v1225_v51 = vsub.f32 %v1223_v20, %v2268_v39 }
 0x1d1   : > { %1124 = vmatpush.msra.mxu0 %v2188_v48  ;;  %1185 = vmatpush.msra.mxu1 %v1184_v10  ;;  %v1220_v56 = vand.u32 4294901760, %v1219_v45  ;;  %v1231_v57 = vsub.f32 %v1229_v31, %v2274_v49  ;;  %v1237_v63 = vsub.f32 %v1235_v37, %v2280_v55  ;;  %v1140_v9 = vsub.f32 %v1089_v61, %v2293_v3 }
 0x1d2   : > { %1284 = vmatpush.msra.mxu2 %v1199_v53  ;;  %1337 = vmatpush.msra.mxu3 %v2188_v48  ;;  %v1247_v53 = vsub.f32 %v1091_v26, %v2266_v38  ;;  %v2285_v58 = vand.u32 4294901760, %v1241_v47  ;;  %v1226_v62 = vand.u32 4294901760, %v1225_v51 }
 0x1d3   : > { %1126 = vmatpush.msra.mxu0 %v2198_v54  ;;  %1191 = vmatpush.msra.mxu1 %v1190_v16  ;;  %v1232_v4 = vand.u32 4294901760, %v1231_v57  ;;  %v1141_v15 = vand.u32 4294901760, %v1140_v9  ;;  %v2310_v16 = vand.u32 4294901760, %v1090_v14 }
 0x1d4   : > { %1287 = vmatpush.msra.mxu2 %v1205_v0  ;;  %1339 = vmatpush.msra.mxu3 %v2198_v54  ;;  %v2290_v0 = vand.u32 4294901760, %v1247_v53  ;;  %v1243_v5 = vsub.f32 %v1241_v47, %v2285_v58 }
 0x1d5   : > { %1128 = vmatpush.msra.mxu0 %v2216_v1  ;;  %1197 = vmatpush.msra.mxu1 %v1196_v25 }
 0x1d6   : > { %1290 = vmatpush.msra.mxu2 %v1211_v6  ;;  %1341 = vmatpush.msra.mxu3 %v2216_v1  ;;  %v1238_v6 = vand.u32 4294901760, %v1237_v63  ;;  %v1249_v8 = vsub.f32 %v1247_v53, %v2290_v0  ;;  %v1244_v10 = vand.u32 4294901760, %v1243_v5 }
 0x1d7   : > { %1130 = vmatpush.msra.mxu0 %v2227_v7  ;;  %1203 = vmatpush.msra.mxu1 %v1202_v34 }
 0x1d8   : > { %1293 = vmatpush.msra.mxu2 %v1217_v11  ;;  %1343 = vmatpush.msra.mxu3 %v2227_v7  ;;  %v1250_v11 = vand.u32 4294901760, %v1249_v8 }
 0x1d9   : > { %1132 = vmatpush.msra.mxu0 %v2236_v12  ;;  %1209 = vmatpush.msra.mxu1 %v1208_v44 }
 0x1da   : > { %1296 = vmatpush.msra.mxu2 %v1223_v20  ;;  %1345 = vmatpush.msra.mxu3 %v2236_v12 }
 0x1db   : > { %1134 = vmatpush.msra.mxu0 %v2247_v18  ;;  %1215 = vmatpush.msra.mxu1 %v1214_v50 }
 0x1dc   : > { %1299 = vmatpush.msra.mxu2 %v1229_v31  ;;  %1347 = vmatpush.msra.mxu3 %v2247_v18 }
 0x1dd   : > { %1136 = vmatpush.msra.mxu0 %v2258_v32  ;;  %1221 = vmatpush.msra.mxu1 %v1220_v56 }
 0x1de   : > { %1302 = vmatpush.msra.mxu2 %v1235_v37  ;;  %1349 = vmatpush.msra.mxu3 %v2258_v32 }
 0x1df   : > { %1138 = vmatpush.msra.mxu0 %v2266_v38  ;;  %1227 = vmatpush.msra.mxu1 %v1226_v62 }
 0x1e0   : > { %1305 = vmatpush.msra.mxu2 %v1241_v47  ;;  %1351 = vmatpush.msra.mxu3 %v2266_v38 }
 0x1e1   : > { %1368 = vmatpush.msrb.mxu0 %v2174_v41  ;;  %1233 = vmatpush.msra.mxu1 %v1232_v4 }
 0x1e2   : > { %1308 = vmatpush.msra.mxu2 %v1247_v53  ;;  %1743 = vmatpush.msrb.mxu3 %v2132_v22 }
 0x1e3   : > { %1372 = vmatpush.msrb.mxu0 %v2176_v42  ;;  %1239 = vmatpush.msra.mxu1 %v1238_v6 }
 0x1e4   : > { %1727 = vmatpush.msrb.mxu2 %v2174_v41  ;;  %1744 = vmatpush.msrb.mxu3 %v2134_v23  ;;  %v1142_v41 = vsub.f32 %v1140_v9, %v1141_v15 }
 0x1e5   : > { %1376 = vmatpush.msrb.mxu0 %v2178_v43  ;;  %1245 = vmatpush.msra.mxu1 %v1244_v10 }
 0x1e6   : > { %1728 = vmatpush.msrb.mxu2 %v2176_v42  ;;  %1745 = vmatpush.msrb.mxu3 %v2136_v24  ;;  %v1148_v42 = vsub.f32 %v1090_v14, %v2310_v16 }
 0x1e7   : > { %1380 = vmatpush.msrb.mxu0 %v2185_v46  ;;  %1251 = vmatpush.msra.mxu1 %v1250_v11 }
 0x1e8   : > { %1729 = vmatpush.msrb.mxu2 %v2178_v43  ;;  %1746 = vmatpush.msrb.mxu3 %v2147_v28 }
 0x1e9   : > { %1384 = vmatpush.msrb.mxu0 %v2194_v52  ;;  %1439 = vmatpush.msrb.mxu1 %v2132_v22  ;;  %v1143_v22 = vand.u32 4294901760, %v1142_v41 }
 0x1ea   : > { %1730 = vmatpush.msrb.mxu2 %v2185_v46  ;;  %1747 = vmatpush.msrb.mxu3 %v2149_v29 }
 0x1eb   : > { %1388 = vmatpush.msrb.mxu0 %v2205_v59  ;;  %1441 = vmatpush.msrb.mxu1 %v2134_v23  ;;  %v1149_v23 = vand.u32 4294901760, %v1148_v42 }
 0x1ec   : > { %1731 = vmatpush.msrb.mxu2 %v2194_v52  ;;  %1748 = vmatpush.msrb.mxu3 %v2151_v30 }
 0x1ed   : > { %1392 = vmatpush.msrb.mxu0 %v2208_v60  ;;  %1443 = vmatpush.msrb.mxu1 %v2136_v24  ;;  %v1150_v24 = vsub.f32 %v1148_v42, %v1149_v23 }
 0x1ee   : > { %1732 = vmatpush.msrb.mxu2 %v2205_v59  ;;  %1144 = vmatmul.f32.vlgmr.msra.gmra.mxu0 %v1143_v22 }
 0x1ef   : > { %1396 = vmatpush.msrb.mxu0 %v2219_v2  ;;  %1445 = vmatpush.msrb.mxu1 %v2147_v28  ;;  %v1151_v28 = vand.u32 4294901760, %v1150_v24 }
 0x1f0   : > { %1733 = vmatpush.msrb.mxu2 %v2208_v60  ;;  %1749 = vmatpush.msrb.mxu3 %v2164_v36 }
 0x1f1   : > { %1447 = vmatpush.msrb.mxu1 %v2149_v29  ;;  %1400 = vmatpush.msrb.mxu0 %v2238_v13 }
 0x1f2   : > { %1734 = vmatpush.msrb.mxu2 %v2219_v2  ;;  %1750 = vmatpush.msrb.mxu3 %v2171_v40 }
 0x1f3   : > { %1311 = vmatmul.f32.vlgmr.msra.gmra.mxu2 %v1140_v9  ;;  %1404 = vmatpush.msrb.mxu0 %v2249_v21 }
 0x1f4   : > { %1735 = vmatpush.msrb.mxu2 %v2238_v13  ;;  %1449 = vmatpush.msrb.mxu1 %v2151_v30 }
 0x1f5   : > { %1355 = vmatmul.f32.vlgmr.msra.gmra.mxu3 %v1141_v15  ;;  %1408 = vmatpush.msrb.mxu0 %v2260_v33 }
 0x1f6   : > { %1736 = vmatpush.msrb.mxu2 %v2249_v21  ;;  %1451 = vmatpush.msrb.mxu1 %v2164_v36 }
 0x1f7   : > { %1751 = vmatpush.msrb.mxu3 %v2188_v48  ;;  %1253 = vmatmul.f32.vlgmr.msra.gmra.mxu1 %v2293_v3 }
 0x1f8   : > { %1737 = vmatpush.msrb.mxu2 %v2260_v33  ;;  %1412 = vmatpush.msrb.mxu0 %v2268_v39 }
 0x1f9   : > { %1453 = vmatpush.msrb.mxu1 %v2171_v40  ;;  %1752 = vmatpush.msrb.mxu3 %v2198_v54 }
 0x1fa   : > { %1152 = vmatmul.f32.gmra.mxu0 %v1151_v28  ;;  %1738 = vmatpush.msrb.mxu2 %v2268_v39 }
 0x1fb   : > { %1416 = vmatpush.msrb.mxu0 %v2274_v49  ;;  %1455 = vmatpush.msrb.mxu1 %v2188_v48 }
 0x1fc   : > { %1753 = vmatpush.msrb.mxu3 %v2216_v1  ;;  %1316 = vmatmul.f32.gmra.mxu2 %v1148_v42 }
 0x1fd   : > { %1739 = vmatpush.msrb.mxu2 %v2274_v49  ;;  %1420 = vmatpush.msrb.mxu0 %v2280_v55 }
 0x1fe   : > { %1457 = vmatpush.msrb.mxu1 %v2198_v54  ;;  %1754 = vmatpush.msrb.mxu3 %v2227_v7 }
 0x1ff   : > { %1361 = vmatmul.f32.gmra.mxu3 %v1149_v23  ;;  %1740 = vmatpush.msrb.mxu2 %v2280_v55 }
 0x200   : > { %1424 = vmatpush.msrb.mxu0 %v2285_v58  ;;  %1459 = vmatpush.msrb.mxu1 %v2216_v1 }
 0x201   : > { %1755 = vmatpush.msrb.mxu3 %v2236_v12  ;;  %1257 = vmatmul.f32.gmra.mxu1 %v2310_v16 }
 0x202   : > { %1741 = vmatpush.msrb.mxu2 %v2285_v58  ;;  %1428 = vmatpush.msrb.mxu0 %v2290_v0 }
 0x203   : > { %1461 = vmatpush.msrb.mxu1 %v2227_v7  ;;  %1756 = vmatpush.msrb.mxu3 %v2247_v18 }
 0x204   : > { %1430 = vmatmul.f32.vlgmr.msrb.gmra.mxu0 %v2293_v3  ;;  %1742 = vmatpush.msrb.mxu2 %v2290_v0 }
 0x205   : > { %1463 = vmatpush.msrb.mxu1 %v2236_v12  ;;  %1757 = vmatpush.msrb.mxu3 %v2258_v32 }
 0x206   : > { %1434 = vmatmul.f32.vlgmr.msrb.gmra.mxu2 %v2310_v16 }
 0x207   : > { %1465 = vmatpush.msrb.mxu1 %v2247_v18  ;;  %1758 = vmatpush.msrb.mxu3 %v2266_v38 }
 0x208   : > { %1475 = vmatmul.f32.vlgmr.msrb.gmra.mxu3 %v2310_v16 }
 0x209   : > { %1467 = vmatpush.msrb.mxu1 %v2258_v32 }
 0x20b   : > { %1469 = vmatpush.msrb.mxu1 %v2266_v38 }
 0x20c   : > { %1471 = vmatmul.f32.vlgmr.msrb.gmra.mxu1 %v2293_v3 }
 0x20d   : > { %1857 = shalt.err (!%p1854_p5)
}
 0x20e   : > { %1759 = dma.vmem_to_hbm [thread:$0]  (%p1995_p4), %s1510_s18, 16, %s1512_s19, %s1490_s22   ;;  %v1817_v26 = vld [vmem:[%s2425_s4] ss:$0 sm:$0xff] }
 0x26b   : > { %v1145_v29 = vpop.f32.mrf.mxu0 }
 0x274   : > { %v1254_v30 = vpop.f32.mrf.mxu1 }
 0x275   : > { %v1255_v46 = vadd.f32 %v1254_v30, %v1145_v29 }
 0x276   : > { %v1312_v36 = vpop.f32.mrf.mxu2 }
 0x277   : > { %v1153_v43 = vpop.f32.mrf.mxu0  ;;  %v1313_v59 = vadd.f32 %v1312_v36, %v1255_v46 }
 0x278   : > { %v1356_v40 = vpop.f32.mrf.mxu3 }
 0x279   : > { %v1357_v7 = vadd.f32 %v1356_v40, %v1313_v59 }
 0x27e   : > { %v1258_v48 = vpop.f32.mrf.mxu1 }
 0x27f   : > { %v1317_v52 = vpop.f32.mrf.mxu2  ;;  %v1259_v54 = vadd.f32 %v1258_v48, %v1153_v43 }
 0x281   : > { %v1318_v1 = vadd.f32 %v1317_v52, %v1259_v54  ;;  %v1431_v2 = vpop.f32.mrf.mxu0 }
 0x282   : > { %v1362_v60 = vpop.f32.mrf.mxu3  ;;  %v1432_v12 = vadd.f32 %v1431_v2, %v1357_v7 }
 0x283   : > { %v1363_v13 = vadd.f32 %v1362_v60, %v1318_v1 }
 0x289   : > { %v1435_v20 = vpop.f32.mrf.mxu2  ;;  %v1472_v18 = vpop.f32.mrf.mxu1 }
 0x28a   : > { %v1436_v21 = vadd.f32 %v1435_v20, %v1363_v13  ;;  %v1473_v25 = vadd.f32 %v1472_v18, %v1432_v12 }
 0x28b   : > { %v1476_v27 = vpop.f32.mrf.mxu3 }
 0x28c   : > { %v1479_v31 = vmul.f32 %v2119_v17, %v1473_v25  ;;  %v1477_v32 = vadd.f32 %v1476_v27, %v1436_v21 }
 0x28e   : > { %v1485_v33 = vadd.f32 %v1817_v26, %v1479_v31  ;;  %v1480_v34 = vmul.f32 %v2121_v19, %v1477_v32 }
 0x290   : > { %1487 = vst [vmem:[%s2027_s24] sm:$0xff] %v1485_v33  ;;  %v1486_v35 = vadd.f32 %v1817_v26, %v1480_v34 }
 0x292   : > { %1488 = vst [vmem:[%s2027_s24 + $0x8] sm:$0xff] %v1486_v35 }
 0x293 PF: > { %p1765_p4 = scmp.ge.s32.totalorder %s1912_s30, 2  ;;  %s1527_s11 = sand.u32 1, %s1892_s25  }
 0x294   : > { %s1528_s16 = scalar_lea.sflag [#allocation7], %s1527_s11 }
 0x295   : > { %p1762_p6 = pnand %p1765_p4, %p2002_p8 }
 0x297   : > { %p1763_p7 = pneg %p1762_p6 }
 0x299   : > { %1887 = dma.done.wait (%p1763_p7), %s1528_s16, 16  }
 0x29a   : > { %1889 = vsyncadd (%p1763_p7), %s1528_s16, 4294967280  ;;  %s28_s30 = sadd.s32 1, %s1912_s30   ;;  %s2437_s28 = sld [smem:[#allocation27_spill]] }
 0x29b   : > { %p25_p9 = scmp.ge.s32.totalorder %s28_s30, 4   ;;  %s2438_s29 = sld [smem:[#allocation28_spill]] }
 0x29c   : > { %s2439_s25 = smov %s1896_s26  ;;  %s2440_s26 = smov %s1900_s27 }
 0x29d   : > { %s2441_s27 = smov %s2008_s13  ;;  %27 = sbr.rel (!%p25_p9) target bundleno = 10 (0xa), region = 654 }
 0x2a2   :  { %1545 = vsyncpa [#allocation7], 1 }
 0x2a3   :  { %1547 = vsyncpa [#allocation7 + $0x1], 1 }
 0x2a4   :  { %1548 = vsyncmov [#allocation3] }
 0x2a7   :  { %s1549_s12 = vpop.sfrf %1548 }
 0x2a8   :  { %p1725_p8 = scmp.ne.s32.totalorder %s1549_s12, 0 }
 0x2aa   :  { %1553 = shalt.err (%p1725_p8)  }

</bundles_post_ra>
